<compile_context>
chip_gen: v7x
topology: tpu7x:2x2x1
jax: 0.10.0
libtpu: 0.0.40
codegen_flags: <defaults>
</compile_context>

<pallas_src>
import functools

import jax
import jax.numpy as jnp
from jax.experimental import pallas as pl
from jax.experimental.pallas import tpu as pltpu


_SMALL_K = 8  # contractions this small skip the MXU and run as VPU FMAs


def _siren_mlp_kernel(x_ref, *refs, apply_sin):
    """refs = (W0, b0, W1, b1, ..., WL, bL, out_ref).

    Wi are [dout, din] (w0 already folded in), bi are [dout, 1].
    x_ref / out_ref are feature-major tiles: [dim, tile_points].
    apply_sin[i] is True for sine layers, False for the final linear layer.
    """
    out_ref = refs[-1]
    param_refs = refs[:-1]
    n_layers = len(param_refs) // 2

    h = x_ref[...].astype(jnp.float32)                         # [din0, tile]
    for li in range(n_layers):
        w = param_refs[2 * li][...].astype(jnp.float32)        # [dout, din]
        b = param_refs[2 * li + 1][...].astype(jnp.float32)    # [dout, 1]
        dout, din = w.shape
        if din <= _SMALL_K:
            # Tiny-K contraction: outer-product form on the VPU; avoids paying
            # MXU push/pop latency for a 2-row systolic pass.
            acc = w[:, 0:1] * h[0:1, :]                        # [dout, tile]
            for kk in range(1, din):
                acc = acc + w[:, kk:kk + 1] * h[kk:kk + 1, :]
            pre = acc + b
        else:
            pre = jnp.dot(w, h, preferred_element_type=jnp.float32) + b
        h = jnp.sin(pre) if apply_sin[li] else pre
    out_ref[...] = h.astype(out_ref.dtype)


def _prepare_params(params, w0s):
    """Fold w0 into (W, b); return feature-major params and activation flags."""
    prepped = []
    apply_sin = []
    for (w, b), w0 in zip(params, w0s):
        w = jnp.asarray(w, jnp.float32)                 # [dout, din]
        b = jnp.asarray(b, jnp.float32).reshape(-1, 1)  # [dout, 1]
        if w0 is not None:
            w = w0 * w
            b = w0 * b
            apply_sin.append(True)
        else:
            apply_sin.append(False)
        prepped.append((w, b))
    return prepped, tuple(apply_sin)


def _choose_tile(n_pad, max_tile_cols):
    """Largest multiple of 128 that divides n_pad, capped; prefer >=2 steps."""
    cap = min(max_tile_cols, n_pad)
    if n_pad >= 256:
        cap = min(cap, n_pad // 2)  # keep >= 2 grid steps (v7x has 2 TCs)
    tile = 128
    t = 128
    while t <= cap:
        if n_pad % t == 0:
            tile = t
        t += 128
    return tile


def extended_siren_forward(x, params, w0s, *, max_tile_cols=4096):
    """x: [N, dim_in] float32.  params: list of (W [dout, din], b [dout])."""
    n, dim_in = x.shape
    dim_out = params[-1][0].shape[0]
    prepped, apply_sin = _prepare_params(params, w0s)

    # Feature-major layout: points on the lane (last) axis. Pad N to a
    # multiple of 128 so every tile is lane-dense; padding is sliced off after.
    x_t = x.T                                                  # [dim_in, N]
    n_pad = ((n + 127) // 128) * 128
    if n_pad != n:
        x_t = jnp.pad(x_t, ((0, 0), (0, n_pad - n)))

    tile = _choose_tile(n_pad, max_tile_cols)
    grid = (n_pad // tile,)

    flat_params = []
    in_specs = [pl.BlockSpec((dim_in, tile), lambda i: (0, i))]
    for w, b in prepped:
        # Grid-invariant operands: whole-array resident in VMEM, un-pipelined.
        flat_params.append(w)
        in_specs.append(pl.BlockSpec(memory_space=pltpu.MemorySpace.VMEM))
        flat_params.append(b)
        in_specs.append(pl.BlockSpec(memory_space=pltpu.MemorySpace.VMEM))

    kernel = functools.partial(_siren_mlp_kernel, apply_sin=apply_sin)

    # Per-tile VMEM footprint here is tiny (~a few hundred KB even at 4096
    # points), so the default scoped VMEM limit is fine on v5e/v6e/v7x.
    out_t = pl.pallas_call(
        kernel,
        out_shape=jax.ShapeDtypeStruct((dim_out, n_pad), x.dtype),
        grid_spec=pltpu.PrefetchScalarGridSpec(
            num_scalar_prefetch=0,
            grid=grid,
            in_specs=in_specs,
            out_specs=pl.BlockSpec((dim_out, tile), lambda i: (0, i)),
        ),
        compiler_params=pltpu.CompilerParams(
            dimension_semantics=("parallel",),
        ),
    )(x_t, *flat_params)

    return out_t[:, :n].T                                      # [N, dim_out]


def _siren_init(key, dim_in, dim_out, w0, is_first):
    """Standard SIREN init (uniform), deterministic given `key`.

    Returns W as [dim_out, dim_in] (PyTorch nn.Linear layout) and b as [dim_out].
    """
    kw, kb = jax.random.split(key)
    bound = (1.0 / dim_in) if is_first else (6.0 / dim_in) ** 0.5 / w0
    w = jax.random.uniform(kw, (dim_out, dim_in), jnp.float32, -bound, bound)
    b = jax.random.uniform(kb, (dim_out,), jnp.float32, -bound, bound)
    return w, b


def reference_forward(x, params, w0s):
    h = x
    for (w, b), w0 in zip(params, w0s):
        pre = h @ w.T + b
        h = jnp.sin(w0 * pre) if w0 is not None else pre
    return h


if __name__ == "__main__":
    # Configuration consistent with the module:
    #   original_siren.net = [SirenLayer(2 -> 32, w0=30), SirenLayer(32 -> 32, w0=30)]
    #   inserted layer     =  SirenLayer(32 -> 32, w0=30)
    #   last_layer         =  linear 32 -> 3 (identity activation)
    dim_in, dim_hidden, dim_out = 2, 32, 3
    n_points = 256
    w0 = 30.0

    key = jax.random.PRNGKey(0)
    k_x, k0, k1, k_ins, k_last = jax.random.split(key, 5)

    params = [
        _siren_init(k0, dim_in, dim_hidden, w0, is_first=True),          # first siren layer
        _siren_init(k1, dim_hidden, dim_hidden, w0, is_first=False),     # hidden siren layer
        _siren_init(k_ins, dim_hidden, dim_hidden, w0, is_first=False),  # inserted layer
        _siren_init(k_last, dim_hidden, dim_out, w0, is_first=False),    # last (linear) layer
    ]
    w0s = [w0, w0, w0, None]  # None -> identity activation on the final layer

    # coordinates in [-1, 1], as a SIREN is usually fed
    x = jax.random.uniform(k_x, (n_points, dim_in), jnp.float32, -1.0, 1.0)

    # TODO(synk): bf16 weight/activation casts (a v6e/v7x bandwidth win) are left
    # out to keep f32 tolerance vs. the reference; sin(30*x) amplifies input error.
    out = extended_siren_forward(x, params, w0s)
    out = jax.block_until_ready(out)

    ref = reference_forward(x, params, w0s)
    assert out.shape == (n_points, dim_out)
    assert jnp.allclose(out, ref, atol=1e-4, rtol=1e-4), "mismatch vs pure-JAX reference"

    print("KERNEL_OK")
</pallas_src>

<mosaic_0001>
module attributes {stable_mosaic.version = 11 : i64} {
  func.func @_siren_mlp_kernel(%arg0: i32, %arg1: memref<2x128xf32, #tpu.memory_space<vmem>>, %arg2: memref<32x2xf32, #tpu.memory_space<vmem>>, %arg3: memref<32x1xf32, #tpu.memory_space<vmem>>, %arg4: memref<32x32xf32, #tpu.memory_space<vmem>>, %arg5: memref<32x1xf32, #tpu.memory_space<vmem>>, %arg6: memref<32x32xf32, #tpu.memory_space<vmem>>, %arg7: memref<32x1xf32, #tpu.memory_space<vmem>>, %arg8: memref<3x32xf32, #tpu.memory_space<vmem>>, %arg9: memref<3x1xf32, #tpu.memory_space<vmem>>, %arg10: memref<3x128xf32, #tpu.memory_space<vmem>>) attributes {dimension_semantics = [#tpu.dimension_semantics<parallel>], iteration_bounds = array<i64: 2>, scalar_prefetch = 0 : i64, scratch_operands = 0 : i64, tpu.core_type = #tpu.core_type<tc>, window_params = [{transform_indices = @transform_0, window_bounds = array<i64: 2, 128>}, {pipeline_mode = #tpu.pipeline_mode<synchronous>, transform_indices = @transform_1, window_bounds = array<i64: 32, 2>}, {pipeline_mode = #tpu.pipeline_mode<synchronous>, transform_indices = @transform_2, window_bounds = array<i64: 32, 1>}, {pipeline_mode = #tpu.pipeline_mode<synchronous>, transform_indices = @transform_3, window_bounds = array<i64: 32, 32>}, {pipeline_mode = #tpu.pipeline_mode<synchronous>, transform_indices = @transform_4, window_bounds = array<i64: 32, 1>}, {pipeline_mode = #tpu.pipeline_mode<synchronous>, transform_indices = @transform_5, window_bounds = array<i64: 32, 32>}, {pipeline_mode = #tpu.pipeline_mode<synchronous>, transform_indices = @transform_6, window_bounds = array<i64: 32, 1>}, {pipeline_mode = #tpu.pipeline_mode<synchronous>, transform_indices = @transform_7, window_bounds = array<i64: 3, 32>}, {pipeline_mode = #tpu.pipeline_mode<synchronous>, transform_indices = @transform_8, window_bounds = array<i64: 3, 1>}, {transform_indices = @transform_9, window_bounds = array<i64: 3, 128>}]} {
    %c0 = arith.constant 0 : index
    %c0_0 = arith.constant 0 : index
    %0 = vector.load %arg1[%c0, %c0_0] : memref<2x128xf32, #tpu.memory_space<vmem>>, vector<2x128xf32>
    %c0_1 = arith.constant 0 : index
    %c0_2 = arith.constant 0 : index
    %1 = vector.load %arg2[%c0_1, %c0_2] : memref<32x2xf32, #tpu.memory_space<vmem>>, vector<32x2xf32>
    %c0_3 = arith.constant 0 : index
    %c0_4 = arith.constant 0 : index
    %2 = vector.load %arg3[%c0_3, %c0_4] : memref<32x1xf32, #tpu.memory_space<vmem>>, vector<32x1xf32>
    %3 = vector.extract_strided_slice %1 {offsets = [0, 0], sizes = [32, 1], strides = [1, 1]} : vector<32x2xf32> to vector<32x1xf32>
    %4 = vector.extract_strided_slice %0 {offsets = [0, 0], sizes = [1, 128], strides = [1, 1]} : vector<2x128xf32> to vector<1x128xf32>
    %5 = vector.broadcast %3 : vector<32x1xf32> to vector<32x128xf32>
    %6 = vector.broadcast %4 : vector<1x128xf32> to vector<32x128xf32>
    %7 = arith.mulf %5, %6 : vector<32x128xf32>
    %8 = vector.extract_strided_slice %1 {offsets = [0, 1], sizes = [32, 1], strides = [1, 1]} : vector<32x2xf32> to vector<32x1xf32>
    %9 = vector.extract_strided_slice %0 {offsets = [1, 0], sizes = [1, 128], strides = [1, 1]} : vector<2x128xf32> to vector<1x128xf32>
    %10 = vector.broadcast %8 : vector<32x1xf32> to vector<32x128xf32>
    %11 = vector.broadcast %9 : vector<1x128xf32> to vector<32x128xf32>
    %12 = arith.mulf %10, %11 : vector<32x128xf32>
    %13 = arith.addf %7, %12 : vector<32x128xf32>
    %14 = vector.broadcast %2 : vector<32x1xf32> to vector<32x128xf32>
    %15 = arith.addf %13, %14 : vector<32x128xf32>
    %16 = math.sin %15 : vector<32x128xf32>
    %c0_5 = arith.constant 0 : index
    %c0_6 = arith.constant 0 : index
    %17 = vector.load %arg4[%c0_5, %c0_6] : memref<32x32xf32, #tpu.memory_space<vmem>>, vector<32x32xf32>
    %c0_7 = arith.constant 0 : index
    %c0_8 = arith.constant 0 : index
    %18 = vector.load %arg5[%c0_7, %c0_8] : memref<32x1xf32, #tpu.memory_space<vmem>>, vector<32x1xf32>
    %cst = arith.constant dense<0.000000e+00> : vector<32x128xf32>
    %19 = tpu.matmul %17, %16, %cst {dimension_numbers = #tpu.dot_dimension_numbers<[1], [0], [0], [1], [0, 0, 1, 1], [], []>} : vector<32x32xf32>, vector<32x128xf32>, vector<32x128xf32> -> vector<32x128xf32>
    %20 = vector.broadcast %18 : vector<32x1xf32> to vector<32x128xf32>
    %21 = arith.addf %19, %20 : vector<32x128xf32>
    %22 = math.sin %21 : vector<32x128xf32>
    %c0_9 = arith.constant 0 : index
    %c0_10 = arith.constant 0 : index
    %23 = vector.load %arg6[%c0_9, %c0_10] : memref<32x32xf32, #tpu.memory_space<vmem>>, vector<32x32xf32>
    %c0_11 = arith.constant 0 : index
    %c0_12 = arith.constant 0 : index
    %24 = vector.load %arg7[%c0_11, %c0_12] : memref<32x1xf32, #tpu.memory_space<vmem>>, vector<32x1xf32>
    %cst_13 = arith.constant dense<0.000000e+00> : vector<32x128xf32>
    %25 = tpu.matmul %23, %22, %cst_13 {dimension_numbers = #tpu.dot_dimension_numbers<[1], [0], [0], [1], [0, 0, 1, 1], [], []>} : vector<32x32xf32>, vector<32x128xf32>, vector<32x128xf32> -> vector<32x128xf32>
    %26 = vector.broadcast %24 : vector<32x1xf32> to vector<32x128xf32>
    %27 = arith.addf %25, %26 : vector<32x128xf32>
    %28 = math.sin %27 : vector<32x128xf32>
    %c0_14 = arith.constant 0 : index
    %c0_15 = arith.constant 0 : index
    %29 = vector.load %arg8[%c0_14, %c0_15] : memref<3x32xf32, #tpu.memory_space<vmem>>, vector<3x32xf32>
    %c0_16 = arith.constant 0 : index
    %c0_17 = arith.constant 0 : index
    %30 = vector.load %arg9[%c0_16, %c0_17] : memref<3x1xf32, #tpu.memory_space<vmem>>, vector<3x1xf32>
    %cst_18 = arith.constant dense<0.000000e+00> : vector<3x128xf32>
    %31 = tpu.matmul %29, %28, %cst_18 {dimension_numbers = #tpu.dot_dimension_numbers<[1], [0], [0], [1], [0, 0, 1, 1], [], []>} : vector<3x32xf32>, vector<32x128xf32>, vector<3x128xf32> -> vector<3x128xf32>
    %32 = vector.broadcast %30 : vector<3x1xf32> to vector<3x128xf32>
    %33 = arith.addf %31, %32 : vector<3x128xf32>
    %c0_19 = arith.constant 0 : index
    %c0_20 = arith.constant 0 : index
    %34 = vector.load %arg10[%c0_19, %c0_20] : memref<3x128xf32, #tpu.memory_space<vmem>>, vector<3x128xf32>
    tpu.vector_store %arg10[%c0_19, %c0_20], %33 {strides = array<i32>} : memref<3x128xf32, #tpu.memory_space<vmem>>, vector<3x128xf32>,
    return
  }
  func.func @transform_0(%arg0: i32) -> (i32, i32) {
    %c0_i32 = arith.constant 0 : i32
    %c0_i32_0 = arith.constant 0 : i32
    return %c0_i32, %arg0 : i32, i32
  }
  func.func @transform_1(%arg0: i32) -> (i32, i32) {
    %c0_i32 = arith.constant 0 : i32
    %c0_i32_0 = arith.constant 0 : i32
    %c0_i32_1 = arith.constant 0 : i32
    return %c0_i32, %c0_i32_0 : i32, i32
  }
  func.func @transform_2(%arg0: i32) -> (i32, i32) {
    %c0_i32 = arith.constant 0 : i32
    %c0_i32_0 = arith.constant 0 : i32
    %c0_i32_1 = arith.constant 0 : i32
    return %c0_i32, %c0_i32_0 : i32, i32
  }
  func.func @transform_3(%arg0: i32) -> (i32, i32) {
    %c0_i32 = arith.constant 0 : i32
    %c0_i32_0 = arith.constant 0 : i32
    %c0_i32_1 = arith.constant 0 : i32
    return %c0_i32, %c0_i32_0 : i32, i32
  }
  func.func @transform_4(%arg0: i32) -> (i32, i32) {
    %c0_i32 = arith.constant 0 : i32
    %c0_i32_0 = arith.constant 0 : i32
    %c0_i32_1 = arith.constant 0 : i32
    return %c0_i32, %c0_i32_0 : i32, i32
  }
  func.func @transform_5(%arg0: i32) -> (i32, i32) {
    %c0_i32 = arith.constant 0 : i32
    %c0_i32_0 = arith.constant 0 : i32
    %c0_i32_1 = arith.constant 0 : i32
    return %c0_i32, %c0_i32_0 : i32, i32
  }
  func.func @transform_6(%arg0: i32) -> (i32, i32) {
    %c0_i32 = arith.constant 0 : i32
    %c0_i32_0 = arith.constant 0 : i32
    %c0_i32_1 = arith.constant 0 : i32
    return %c0_i32, %c0_i32_0 : i32, i32
  }
  func.func @transform_7(%arg0: i32) -> (i32, i32) {
    %c0_i32 = arith.constant 0 : i32
    %c0_i32_0 = arith.constant 0 : i32
    %c0_i32_1 = arith.constant 0 : i32
    return %c0_i32, %c0_i32_0 : i32, i32
  }
  func.func @transform_8(%arg0: i32) -> (i32, i32) {
    %c0_i32 = arith.constant 0 : i32
    %c0_i32_0 = arith.constant 0 : i32
    %c0_i32_1 = arith.constant 0 : i32
    return %c0_i32, %c0_i32_0 : i32, i32
  }
  func.func @transform_9(%arg0: i32) -> (i32, i32) {
    %c0_i32 = arith.constant 0 : i32
    %c0_i32_0 = arith.constant 0 : i32
    return %c0_i32, %arg0 : i32, i32
  }
}

</mosaic_0001>

<bundles_post_ra>
// kernel: tpu_custom_call.1
= control target key start
LH: loop header
LB: loop body
LE: loop exit
PB: predicated region body
PF: predicated region fallthrough
CT: control target
= control target key end

     0   :  { %14 = vsyncpa [#allocation3], 0  ;;  %s3511_s0 = inlined_call_operand.vmem [shape: f32[2,256], index: 0, kind: input, shape index: {}]   ;;  %s3512_s1 = inlined_call_operand.vmem [shape: f32[32,2], index: 1, kind: input, shape index: {}]   ;;  %s3513_s2 = inlined_call_operand.vmem [shape: f32[32,1], index: 2, kind: input, shape index: {}]   ;;  %s3514_s3 = inlined_call_operand.vmem [shape: f32[32,32], index: 3, kind: input, shape index: {}]   ;;  %s3515_s4 = inlined_call_operand.vmem [shape: f32[32,1], index: 4, kind: input, shape index: {}]   ;;  %s3516_s5 = inlined_call_operand.vmem [shape: f32[32,32], index: 5, kind: input, shape index: {}]   ;;  %s3517_s6 = inlined_call_operand.vmem [shape: f32[32,1], index: 6, kind: input, shape index: {}]   ;;  %s3518_s7 = inlined_call_operand.vmem [shape: f32[3,32], index: 7, kind: input, shape index: {}]   ;;  %s3519_s8 = inlined_call_operand.vmem [shape: f32[3,1], index: 8, kind: input, shape index: {}]   ;;  %s3520_s9 = inlined_call_operand.hbm [shape: f32[3,256], index: 9, kind: output, shape index: {}]  }
   0x1   :  { %16 = vsyncpa [#allocation3 + $0x1], 0  ;;  %s2497_s30 = smov 0   ;;  %s2499_s10 = smov 0  }
   0x2   :  { %s2501_s11 = smov 0   ;;  %s2503_s12 = smov 0  }
   0x3 LB: > { %s2518_s13 = sadd.s32 4294967295, %s2433_s12   ;;  %s2070_s14 = sadd.s32 4294967294, %s2433_s12   ;;  %s2433_s12 = sphi %s2503_s12, %s3544_s12   ;;  %s2429_s11 = sphi %s2501_s11, %s3543_s11   ;;  %s2425_s10 = sphi %s2499_s10, %s3542_s10   ;;  %s2421_s30 = sphi %s2497_s30, %s3541_s30  }
   0x4   : > { %s2522_s15 = sadd.s32 1, %s2433_s12   ;;  %s223_s16 = sadd.s32 1, %s2429_s11 }
   0x5   : > { %s220_s17 = ssub.s32 %s2433_s12, %s2522_s15  ;;  %p233_p0 = scmp.ne.s32.totalorder %s2429_s11, %s2425_s10 }
   0x6   : > { %p221_p1 = scmp.eq.s32.totalorder %s220_s17, 0  ;;  %p234_p2 = scmp.eq.s32.totalorder %s2518_s13, 1 }
   0x7   : > { %p239_p3 = scmp.ne.s32.totalorder %s2425_s10, %s2421_s30  ;;  %p240_p4 = scmp.eq.s32.totalorder %s2070_s14, 1 }
   0x8   : > { %s2533_s18 = scalar_select %p221_p1, %s2429_s11, %s223_s16  }
   0x9   : > { %p2535_p5 = por %p234_p2, %p233_p0  ;;  %p2539_p6 = por %p240_p4, %p239_p3 }
   0xa   : > { %p2073_p7 = scmp.ge.s32.totalorder %s2433_s12, 1  ;;  %p289_p8 = scmp.lt.s32.totalorder %s2433_s12, 3 }
   0xc   : > { %p290_p9 = pnand %p2073_p7, %p289_p8 }
   0xd   : > { %v331_v0 = vld [vmem:[%s3512_s1 + $0x10] sm:$0xff] (!%p290_p9)  ;;  %v329_v1 = vld [vmem:[%s3512_s1] sm:$0xff] (!%p290_p9)  ;;  %v2435_v2 = vmov (!%p290_p9), 1   ;;  %v330_v3 = vld [vmem:[%s3512_s1 + $0x8] sm:$0xff] (!%p290_p9)  ;;  %v2436_v4 = vmov (!%p290_p9), 0   ;;  %p324_p10 = scmp.lt.s32.totalorder (!%p290_p9), %s2518_s13, 1  ;;  %v357_v19 = vlaneseq (!%p290_p9) }
   0xe   : > { %293 = sbr.rel (%p290_p9) target bundleno = 1229 (0x4cd), region = 56  ;;  %2319 = vset.pattern.permute.xlu0 (!%p290_p9), %v2435_v2  ;;  %2317 = vset.pattern.permute.xlu1 (!%p290_p9), %v2435_v2  ;;  %v332_v5 = vld [vmem:[%s3512_s1 + $0x18] sm:$0xff] (!%p290_p9)  ;;  %v334_v6 = vld [vmem:[%s3513_s2 + $0x8] sm:$0xff] (!%p290_p9)  ;;  %v333_v7 = vld [vmem:[%s3513_s2] sm:$0xff] (!%p290_p9)  ;;  %vm861_vm1 = vcmask (!%p290_p9), 261120   ;;  %s321_s14 = sand.u32 (!%p290_p9), 1, %s2425_s10  }
   0xf   : > { %374 = vperm.xlu0 (!%p290_p9), %2319, %v331_v0   ;;  %366 = vperm.xlu1 (!%p290_p9), %2317, %v329_v1   ;;  %v837_v8 = vld [vmem:[%s3515_s4] sm:$0xff] (!%p290_p9)  ;;  %v335_v9 = vld [vmem:[%s3513_s2 + $0x10] sm:$0xff] (!%p290_p9)  ;;  %v336_v11 = vld [vmem:[%s3513_s2 + $0x18] sm:$0xff] (!%p290_p9)  ;;  %v358_v22 = vshrl.u32 (!%p290_p9), %v357_v19, 7  ;;  %s1998_s26 = scalar_lea.sflag (!%p290_p9), [#allocation3], %s321_s14 }
  0x10   : > { %v839_v10 = vld [vmem:[%s3515_s4 + $0x10] sm:$0xff] (!%p290_p9)  ;;  %v1379_v12 = vld [vmem:[%s3517_s6] sm:$0xff] (!%p290_p9)  ;;  %v838_v13 = vld [vmem:[%s3515_s4 + $0x8] sm:$0xff] (!%p290_p9) }
  0x11   : > { %v1381_v14 = vld [vmem:[%s3517_s6 + $0x10] sm:$0xff] (!%p290_p9)  ;;  %v840_v15 = vld [vmem:[%s3515_s4 + $0x18] sm:$0xff] (!%p290_p9)  ;;  %v1917_v16 = vld [vmem:[%s3519_s8] sm:$0x7] (!%p290_p9)  ;;  %v359_v25 = vsub.s32 (!%p290_p9), 0, %v358_v22  ;;  %v383_v26 = vsub.s32 (!%p290_p9), 1, %v358_v22 }
  0x12   : > { %v1380_v17 = vld [vmem:[%s3517_s6 + $0x8] sm:$0xff] (!%p290_p9)  ;;  %v1382_v18 = vld [vmem:[%s3517_s6 + $0x18] sm:$0xff] (!%p290_p9)  ;;  %v2440_v22 = vmov (!%p290_p9), 2102212464  }
  0x13   : > { %2320 = vset.pattern.permute.xlu0 (!%p290_p9), %v2436_v4  ;;  %370 = vperm.xlu1 (!%p290_p9), %2317, %v330_v3  }
  0x14   : > { %339 = vperm.xlu0 (!%p290_p9), %2320, %v329_v1  }
  0x15   : > { %s325_s16 = scalar_select %p324_p10, %s2518_s13, 1 }
  0x17   : > { %2318 = vset.pattern.permute.xlu1 %v2436_v4  ;;  %s2075_s17 = sshll.u32 %s325_s16, 1  ;;  %s2074_s16 = sshll.u32 %s321_s14, 2 }
  0x18   : > { %344 = vperm.xlu0 %2320, %v330_v3   ;;  %354 = vperm.xlu1 %2318, %v332_v5   ;;  %s327_s23 = scalar_lea.vmem %s3511_s0, %s2075_s17  ;;  %v833_v3 = vld [vmem:[%s3514_s3] sm:$0xff]  ;;  %s2134_s17 = sshll.u32 %s2518_s13, 6 }
  0x19   : > { %v328_v27 = vld [vmem:[%s327_s23] sm:$0x3]  ;;  %2166 = vmatprep.mubr.msk.f32.mxu0 %vm861_vm1, %v833_v3  ;;  %s323_s21 = scalar_lea.vmem [#allocation2], %s2074_s16  ;;  %s3469_s25 = scalar_lea.hbm %s3520_s9, %s2134_s17 }
  0x1a   : > { %v360_v30 = vrot.slane %v328_v27, %v359_v25  ;;  %v384_v31 = vrot.slane %v328_v27, %v383_v26  ;;  %s2011_s22 = sshll.u32 %s323_s21, 4  ;;  %s2446_s13 = smov [#allocation2]   ;;  %s3471_s22 = int_to_ptr.vmem [resolvable:$true] %s2011_s22 }
  0x1b   : > { %s2371_s27 = scalar_lea.vmem %s3471_s22, 64  ;;  %s2375_s28 = sshll.u32 %s2446_s13, 4  ;;  %s2376_s28 = int_to_ptr.vmem [resolvable:$false] %s2375_s28 }
  0x1c   : > { %349 = vperm.xlu0 %2320, %v331_v0   ;;  %2321 = vset.pattern.permute.xlu1 %v2435_v2  ;;  %p2372_p11 = scmp.ne.s32.totalorder %s3471_s22, %s2371_s27  ;;  %s2377_s29 = scalar_lea.vmem %s2376_s28, 128 }
  0x1d   : > { %378 = vperm.xlu1 %2321, %v332_v5   ;;  %p2378_p0 = scmp.lt.s32.totalorder %s3471_s22, %s2376_s28  ;;  %p2379_p1 = scmp.lt.s32.totalorder %s2377_s29, %s2371_s27 }
  0x1e   : > { %p2373_p12 = pnand %p2372_p11, %p2535_p5 }
  0x1f   : > { %p2380_p2 = por %p2379_p1, %p2378_p0 }
  0x20   : > { %400 = vperm.xlu0 %2320, %v334_v6   ;;  %p2374_p13 = pneg %p2373_p12 }
  0x21   : > { %2322 = vset.pattern.permute.xlu1 %v2436_v4 }
  0x22   : > { %395 = vperm.xlu1 %2322, %v333_v7   ;;  %p2381_p3 = pnand %p2380_p2, %p2374_p13 }
  0x24   : > { %843 = vperm.xlu0 %2320, %v837_v8  }
  0x26   : > { %405 = vperm.xlu1 %2322, %v335_v9  }
  0x28   : > { %853 = vperm.xlu0 %2320, %v839_v10  }
  0x2a   : > { %410 = vperm.xlu1 %2322, %v336_v11  }
  0x2c   : > { %1385 = vperm.xlu0 %2320, %v1379_v12  }
  0x2e   : > { %848 = vperm.xlu1 %2322, %v838_v13  }
  0x30   : > { %1395 = vperm.xlu0 %2320, %v1381_v14  }
  0x32   : > { %858 = vperm.xlu1 %2322, %v840_v15   ;;  %v2437_v15 = vmov 683565275  }
  0x34   : > { %1920 = vperm.xlu0 %2320, %v1917_v16  }
  0x36   : > { %1390 = vperm.xlu1 %2322, %v1380_v17   ;;  %v2438_v17 = vmov 2475754826  }
  0x3a   : > { %1400 = vperm.xlu1 %2322, %v1382_v18  }
  0x8e   : > { %v367_v20 = vpop.permute.xlu1 %366  ;;  %v375_v21 = vpop.permute.xlu0 %374 }
  0x8f   : > { %v385_v37 = vmul.f32 %v384_v31, %v367_v20  ;;  %v387_v44 = vmul.f32 %v384_v31, %v375_v21  ;;  %v2439_v20 = vmov 2131351028  }
  0x92   : > { %v371_v23 = vpop.permute.xlu1 %370 }
  0x93   : > { %v340_v24 = vpop.permute.xlu0 %339  ;;  %v386_v34 = vmul.f32 %v384_v31, %v371_v23 }
  0x94   : > { %v361_v35 = vmul.f32 %v360_v30, %v340_v24  ;;  %v2441_v24 = vmov 920167782  }
  0x96   : > { %v389_v42 = vadd.f32 %v385_v37, %v361_v35 }
  0x97   : > { %v345_v28 = vpop.permute.xlu0 %344  ;;  %v355_v29 = vpop.permute.xlu1 %354 }
  0x98   : > { %v362_v32 = vmul.f32 %v360_v30, %v345_v28  ;;  %v364_v59 = vmul.f32 %v360_v30, %v355_v29 }
  0x9a   : > { %v390_v38 = vadd.f32 %v386_v34, %v362_v32 }
  0x9b   : > { %v350_v33 = vpop.permute.xlu0 %349 }
  0x9c   : > { %v379_v36 = vpop.permute.xlu1 %378  ;;  %v363_v40 = vmul.f32 %v360_v30, %v350_v33 }
  0x9d   : > { %v388_v57 = vmul.f32 %v384_v31, %v379_v36  ;;  %v2442_v31 = vmov 1326507024  }
  0x9e   : > { %v391_v51 = vadd.f32 %v387_v44, %v363_v40 }
  0x9f   : > { %v401_v39 = vpop.permute.xlu0 %400  ;;  %v392_v7 = vadd.f32 %v388_v57, %v364_v59 }
  0xa0   : > { %v2601_v41 = vadd.f32 %v401_v39, %v390_v38 }
  0xa1   : > { %v396_v43 = vpop.permute.xlu1 %395 }
  0xa2   : > { %v521_v45 = vand.u32 2147483647, %v2601_v41  ;;  %v524_v46 = vand.u32 2139095040, %v2601_v41  ;;  %v2605_v47 = vadd.f32 %v396_v43, %v389_v42 }
  0xa4   : > { %v525_v48 = vshrl.u32 %v524_v46, 23  ;;  %v528_v49 = vand.u32 8388607, %v521_v45  ;;  %v417_v50 = vand.u32 2147483647, %v2605_v47  ;;  %v420_v52 = vand.u32 2139095040, %v2605_v47 }
  0xa5   : > { %v406_v53 = vpop.permute.xlu1 %405 }
  0xa6   : > { %v2080_v54 = vadd.s32 4294967169, %v525_v48  ;;  %v424_v55 = vand.u32 8388607, %v417_v50  ;;  %v2613_v56 = vadd.f32 %v406_v53, %v391_v51  ;;  %v421_v58 = vshrl.u32 %v420_v52, 23 }
  0xa7   : > { %v529_v60 = vor.u32 8388608, %v528_v49 }
  0xa8   : > { %v531_v61 = vadd.s32 1, %v2080_v54  ;;  %v2076_v62 = vadd.s32 4294967169, %v421_v58  ;;  %v425_v63 = vor.u32 8388608, %v424_v55  ;;  %v625_v0 = vand.u32 2147483647, %v2613_v56 }
  0xa9   : > { %v628_v1 = vand.u32 2139095040, %v2613_v56  ;;  %v411_v2 = vpop.permute.xlu1 %410  ;;  %v2620_v10 = vshll.u32 %v529_v60, 8 }
  0xaa   : > { %vm532_vm0 = vcmp.gt.s32.totalorder %v531_v61, 0  ;;  %v427_v5 = vadd.s32 1, %v2076_v62  ;;  %v2622_v11 = vshll.u32 %v425_v63, 8  ;;  %v2626_v12 = vand.u32 8388607, %v625_v0 }
  0xab   : > { %v533_v4 = vsel %vm532_vm0, %v531_v61, 0  ;;  %v629_v6 = vshrl.u32 %v628_v1, 23  ;;  %v2628_v13 = vadd.f32 %v411_v2, %v392_v7 }
  0xac   : > { %v534_v8 = vshrl.u32 %v533_v4, 5  ;;  %v535_v9 = vand.u32 31, %v533_v4  ;;  %vm428_vm2 = vcmp.gt.s32.totalorder %v427_v5, 0 }
  0xad   : > { %v2633_v19 = vadd.s32 4294967169, %v629_v6  ;;  %v429_v36 = vsel %vm428_vm2, %v427_v5, 0 }
  0xae   : > { %v536_v14 = vsub.s32 32, %v535_v9  ;;  %v538_v16 = vshll.u32 %v2437_v15, %v535_v9  ;;  %v541_v18 = vshll.u32 %v2438_v17, %v535_v9  ;;  %v544_v21 = vshll.u32 %v2439_v20, %v535_v9 }
  0xaf   : > { %v547_v23 = vshll.u32 %v2440_v22, %v535_v9  ;;  %v550_v25 = vshll.u32 %v2441_v24, %v535_v9  ;;  %vm553_vm3 = vcmp.lt.s32.totalorder %v534_v8, 1  ;;  %vm554_vm4 = vcmp.lt.s32.totalorder %v534_v8, 2 }
  0xb0   : > { %v539_v26 = vshrl.u32 %v2438_v17, %v536_v14  ;;  %v542_v27 = vshrl.u32 %v2439_v20, %v536_v14  ;;  %v545_v28 = vshrl.u32 %v2440_v22, %v536_v14  ;;  %v537_v29 = vshrl.u32 %v2437_v15, %v536_v14 }
  0xb1   : > { %v548_v30 = vshrl.u32 %v2441_v24, %v536_v14  ;;  %v551_v32 = vshrl.u32 %v2442_v31, %v536_v14  ;;  %vm555_vm5 = vcmp.lt.s32.totalorder %v534_v8, 3  ;;  %vm556_vm6 = vcmp.lt.s32.totalorder %v534_v8, 4 }
  0xb2   : > { %v540_v33 = vor.u32 %v539_v26, %v538_v16  ;;  %v543_v34 = vor.u32 %v542_v27, %v541_v18  ;;  %v546_v35 = vor.u32 %v545_v28, %v544_v21  ;;  %v431_v39 = vand.u32 31, %v429_v36 }
  0xb3   : > { %v549_v37 = vor.u32 %v548_v30, %v547_v23  ;;  %v552_v38 = vor.u32 %v551_v32, %v550_v25  ;;  %v430_v55 = vshrl.u32 %v429_v36, 5 }
  0xb4   : > { %v557_v40 = vsel %vm553_vm3, %v537_v29, %v540_v33  ;;  %v558_v42 = vsel %vm556_vm6, %v546_v35, 2102212464  ;;  %v561_v43 = vsel %vm553_vm3, %v540_v33, %v543_v34  ;;  %v565_v44 = vsel %vm553_vm3, %v543_v34, %v546_v35 }
  0xb5   : > { %v559_v46 = vsel %vm555_vm5, %v543_v34, %v558_v42  ;;  %v562_v48 = vsel %vm556_vm6, %v549_v37, 920167782  ;;  %v566_v49 = vsel %vm556_vm6, %v552_v38, 1326507024  ;;  %v432_v51 = vsub.s32 32, %v431_v39 }
  0xb6   : > { %v560_v52 = vsel %vm554_vm4, %v557_v40, %v559_v46  ;;  %v563_v53 = vsel %vm555_vm5, %v546_v35, %v562_v48  ;;  %v567_v54 = vsel %vm555_vm5, %v549_v37, %v566_v49  ;;  %v434_v60 = vshll.u32 %v2437_v15, %v431_v39 }
  0xb7   : > { %v564_v57 = vsel %vm554_vm4, %v561_v43, %v563_v53  ;;  %v568_v58 = vsel %vm554_vm4, %v565_v44, %v567_v54  ;;  %v576_v59 = vmul.u32 %v2620_v10, %v560_v52  ;;  %v433_v2 = vshrl.u32 %v2437_v15, %v432_v51 }
  0xb8   : > { %v2657_v61 = vmul.u32.u64.low %v2620_v10, %v568_v58  ;;  %v2658_v62 = vmul.u32.u64.high %v2620_v10, %v568_v58, %v2657_v61  ;;  %v2661_v63 = vmul.u32.u64.low %v2620_v10, %v564_v57  ;;  %v2662_v1 = vmul.u32.u64.high %v2620_v10, %v564_v57, %v2661_v63 }
  0xb9   : > { %v435_v3 = vshrl.u32 %v2438_v17, %v432_v51  ;;  %v437_v4 = vshll.u32 %v2438_v17, %v431_v39  ;;  %v438_v5 = vshrl.u32 %v2439_v20, %v432_v51  ;;  %v440_v6 = vshll.u32 %v2439_v20, %v431_v39 }
  0xba   : > { %v441_v7 = vshrl.u32 %v2440_v22, %v432_v51  ;;  %v443_v8 = vshll.u32 %v2440_v22, %v431_v39  ;;  %v444_v9 = vshrl.u32 %v2441_v24, %v432_v51  ;;  %v446_v10 = vshll.u32 %v2441_v24, %v431_v39 }
  0xbb   : > { %v436_v14 = vor.u32 %v435_v3, %v434_v60  ;;  %v439_v16 = vor.u32 %v438_v5, %v437_v4  ;;  %v447_v18 = vshrl.u32 %v2442_v31, %v432_v51  ;;  %vm578_vm7 = vc.u32 %v2658_v62, %v2661_v63 }
  0xbc   : > { %v579_v21 = vadd.s32 1, %v2662_v1  ;;  %v442_v23 = vor.u32 %v441_v7, %v440_v6  ;;  %vm449_vm8 = vcmp.lt.s32.totalorder %v430_v55, 1  ;;  %v445_v25 = vor.u32 %v444_v9, %v443_v8 }
  0xbd   : > { %v448_v26 = vor.u32 %v447_v18, %v446_v10  ;;  %vm450_vm9 = vcmp.lt.s32.totalorder %v430_v55, 2  ;;  %vm451_vm10 = vcmp.lt.s32.totalorder %v430_v55, 3  ;;  %vm452_vm11 = vcmp.lt.s32.totalorder %v430_v55, 4 }
  0xbe   : > { %v580_v27 = vsel %vm578_vm7, %v579_v21, %v2662_v1  ;;  %v453_v28 = vsel %vm449_vm8, %v433_v2, %v436_v14  ;;  %v457_v29 = vsel %vm449_vm8, %v436_v14, %v439_v16  ;;  %v454_v32 = vsel %vm452_vm11, %v442_v23, 2102212464 }
  0xbf   : > { %v581_v30 = vadd.s32 %v580_v27, %v576_v59  ;;  %v458_v33 = vsel %vm452_vm11, %v445_v25, 920167782  ;;  %v461_v34 = vsel %vm449_vm8, %v439_v16, %v442_v23  ;;  %v455_v35 = vsel %vm451_vm10, %v439_v16, %v454_v32 }
  0xc0   : > { %v459_v36 = vsel %vm451_vm10, %v442_v23, %v458_v33  ;;  %v462_v37 = vsel %vm452_vm11, %v448_v26, 1326507024  ;;  %v635_v38 = vadd.s32 1, %v2633_v19  ;;  %v633_v43 = vor.u32 8388608, %v2626_v12 }
  0xc1   : > { %v582_v39 = vadd.s32 536870912, %v581_v30  ;;  %v460_v40 = vsel %vm450_vm9, %v457_v29, %v459_v36  ;;  %v463_v42 = vsel %vm451_vm10, %v445_v25, %v462_v37  ;;  %v456_v44 = vsel %vm450_vm9, %v453_v28, %v455_v35 }
  0xc2   : > { %v464_v46 = vsel %vm450_vm9, %v461_v34, %v463_v42  ;;  %v2683_v48 = vmul.u32.u64.low %v2622_v11, %v460_v40  ;;  %v2684_v49 = vmul.u32.u64.high %v2622_v11, %v460_v40, %v2683_v48  ;;  %vm636_vm12 = vcmp.gt.s32.totalorder %v635_v38, 0 }
  0xc3   : > { %v2687_v51 = vshrl.u32 %v582_v39, 30  ;;  %v2690_v52 = vmul.u32.u64.low %v2622_v11, %v464_v46  ;;  %v2691_v19 = vmul.u32.u64.high %v2622_v11, %v464_v46, %v2690_v52  ;;  %v637_v53 = vsel %vm636_vm12, %v635_v38, 0 }
  0xc4   : > { %v639_v12 = vand.u32 31, %v637_v53  ;;  %v729_v57 = vand.u32 2147483647, %v2628_v13  ;;  %v577_v55 = vadd.s32 %v2661_v63, %v2658_v62  ;;  %v472_v58 = vmul.u32 %v2622_v11, %v456_v44 }
  0xc5   : > { %v584_v54 = vshll.u32 %v2687_v51, 30  ;;  %v475_v59 = vadd.s32 1, %v2684_v49  ;;  %v2698_v60 = vshll.u32 %v633_v43, 8  ;;  %vm474_vm13 = vc.u32 %v2691_v19, %v2683_v48 }
  0xc6   : > { %v640_v1 = vsub.s32 32, %v639_v12  ;;  %v732_v2 = vand.u32 2139095040, %v2628_v13  ;;  %v638_v4 = vshrl.u32 %v637_v53, 5  ;;  %v642_v5 = vshll.u32 %v2437_v15, %v639_v12 }
  0xc7   : > { %v2700_v61 = vsub.s32 %v581_v30, %v584_v54  ;;  %v476_v3 = vsel %vm474_vm13, %v475_v59, %v2684_v49  ;;  %v645_v62 = vshll.u32 %v2438_v17, %v639_v12  ;;  %v648_v7 = vshll.u32 %v2439_v20, %v639_v12 }
  0xc8   : > { %v477_v63 = vadd.s32 %v476_v3, %v472_v58  ;;  %v643_v6 = vshrl.u32 %v2438_v17, %v640_v1  ;;  %v646_v8 = vshrl.u32 %v2439_v20, %v640_v1  ;;  %v649_v9 = vshrl.u32 %v2440_v22, %v640_v1 }
  0xc9   : > { %v587_v11 = vsub.s32 0, %v2700_v61  ;;  %v651_v14 = vshll.u32 %v2440_v22, %v639_v12  ;;  %v652_v16 = vshrl.u32 %v2441_v24, %v640_v1  ;;  %v654_v23 = vshll.u32 %v2441_v24, %v639_v12 }
  0xca   : > { %v478_v18 = vadd.s32 536870912, %v477_v63  ;;  %v644_v21 = vor.u32 %v643_v6, %v642_v5  ;;  %v647_v25 = vor.u32 %v646_v8, %v645_v62  ;;  %v650_v26 = vor.u32 %v649_v9, %v648_v7 }
  0xcb   : > { %v2081_v10 = vmin.u32 %v587_v11, %v2700_v61  ;;  %v653_v27 = vor.u32 %v652_v16, %v651_v14  ;;  %v655_v28 = vshrl.u32 %v2442_v31, %v640_v1  ;;  %v641_v32 = vshrl.u32 %v2437_v15, %v640_v1 }
  0xcc   : > { %v479_v30 = vshrl.u32 %v478_v18, 30  ;;  %v733_v33 = vshrl.u32 %v732_v2, 23  ;;  %vm657_vm14 = vcmp.lt.s32.totalorder %v638_v4, 1  ;;  %vm658_vm15 = vcmp.lt.s32.totalorder %v638_v4, 2 }
  0xcd   : > { %v589_v29 = vclz %v2081_v10  ;;  %v656_v34 = vor.u32 %v655_v28, %v654_v23  ;;  %vm660_vm0 = vcmp.lt.s32.totalorder %v638_v4, 4  ;;  %v665_v38 = vsel %vm657_vm14, %v644_v21, %v647_v25 }
  0xce   : > { %v480_v36 = vshll.u32 %v479_v30, 30  ;;  %v662_v37 = vsel %vm660_vm0, %v650_v26, 2102212464  ;;  %vm659_vm2 = vcmp.lt.s32.totalorder %v638_v4, 3  ;;  %v661_v39 = vsel %vm657_vm14, %v641_v32, %v644_v21 }
  0xcf   : > { %v2082_v35 = vadd.s32 4294967294, %v589_v29  ;;  %v666_v40 = vsel %vm660_vm0, %v653_v27, 920167782  ;;  %v670_v42 = vsel %vm660_vm0, %v656_v34, 1326507024  ;;  %v669_v46 = vsel %vm657_vm14, %v647_v25, %v650_v26 }
  0xd0   : > { %v2719_v43 = vsub.s32 %v477_v63, %v480_v36  ;;  %v667_v44 = vsel %vm659_vm2, %v650_v26, %v666_v40  ;;  %v663_v52 = vsel %vm659_vm2, %v647_v25, %v662_v37  ;;  %v671_v54 = vsel %vm659_vm2, %v653_v27, %v670_v42 }
  0xd1   : > { %vm2083_vm3 = vcmp.lt.s32.totalorder %v2082_v35, 0  ;;  %v668_v53 = vsel %vm658_vm15, %v665_v38, %v667_v44  ;;  %v736_v1 = vand.u32 8388607, %v729_v57  ;;  %v672_v2 = vsel %vm658_vm15, %v669_v46, %v671_v54 }
  0xd2   : > { %v592_v49 = vsel %vm2083_vm3, 0, %v2082_v35  ;;  %v483_v59 = vsub.s32 0, %v2719_v43  ;;  %v2727_v3 = vmul.u32.u64.low %v2698_v60, %v668_v53  ;;  %v2728_v5 = vmul.u32.u64.high %v2698_v60, %v668_v53, %v2727_v3 }
  0xd3   : > { %v593_v12 = vsub.s32 32, %v592_v49  ;;  %v597_v58 = vsub.s32 4294967266, %v592_v49  ;;  %v2088_v62 = vadd.s32 4294967169, %v733_v33  ;;  %v664_v7 = vsel %vm658_vm15, %v661_v39, %v663_v52 }
  0xd4   : > { %v2077_v6 = vmin.u32 %v483_v59, %v2719_v43  ;;  %v594_v8 = vshll.u32 %v2700_v61, %v592_v49  ;;  %v2735_v9 = vmul.u32.u64.low %v2698_v60, %v672_v2  ;;  %v2736_v14 = vmul.u32.u64.high %v2698_v60, %v672_v2, %v2735_v9 }
  0xd5   : > { %v595_v11 = vshrl.u32 %v577_v55, %v593_v12  ;;  %v598_v63 = vadd.s32 127, %v597_v58  ;;  %v739_v16 = vadd.s32 1, %v2088_v62  ;;  %v737_v21 = vor.u32 8388608, %v736_v1 }
  0xd6   : > { %v485_v18 = vclz %v2077_v6  ;;  %v503_v23 = vsub.s32 4, %v479_v30  ;;  %vm419_vm4 = vcmp.lt.s32.totalorder %v2605_v47, 0  ;;  %v683_v55 = vadd.s32 1, %v2728_v5 }
  0xd7   : > { %v599_v10 = vshll.u32 %v598_v63, 23  ;;  %vm740_vm5 = vcmp.gt.s32.totalorder %v739_v16, 0  ;;  %v607_v25 = vsub.s32 4, %v2687_v51  ;;  %v596_v4 = vor.u32 %v595_v11, %v594_v8 }
  0xd8   : > { %v2078_v27 = vadd.s32 4294967294, %v485_v18  ;;  %v741_v61 = vsel %vm740_vm5, %v739_v16, 0  ;;  %v473_v28 = vadd.s32 %v2683_v48, %v2691_v19  ;;  %v680_v29 = vmul.u32 %v2698_v60, %v664_v7 }
  0xd9   : > { %v600_v26 = vor.u32 4788187, %v599_v10  ;;  %vm682_vm6 = vc.u32 %v2736_v14, %v2727_v3  ;;  %v743_v32 = vand.u32 31, %v741_v61  ;;  %v2747_v34 = vshll.u32 %v737_v21, 8 }
  0xda   : > { %vm2079_vm7 = vcmp.lt.s32.totalorder %v2078_v27, 0  ;;  %v684_v33 = vsel %vm682_vm6, %v683_v55, %v2728_v5  ;;  %v2751_v35 = vsel %vm419_vm4, %v503_v23, %v479_v30  ;;  %v603_v48 = vcvt.s32.f32 %v596_v4 }
  0xdb   : > { %v601_v36 = vand.u32 2147483647, %v600_v26  ;;  %v488_v37 = vsel %vm2079_vm7, 0, %v2078_v27  ;;  %v685_v38 = vadd.s32 %v684_v33, %v680_v29  ;;  %v744_v39 = vsub.s32 32, %v743_v32 }
  0xdc   : > { %v489_v19 = vsub.s32 32, %v488_v37  ;;  %v493_v60 = vsub.s32 4294967266, %v488_v37  ;;  %v742_v40 = vshrl.u32 %v741_v61, 5  ;;  %v490_v42 = vshll.u32 %v2719_v43, %v488_v37 }
  0xdd   : > { %v686_v44 = vadd.s32 536870912, %v685_v38  ;;  %v746_v46 = vshll.u32 %v2437_v15, %v743_v32  ;;  %v747_v49 = vshrl.u32 %v2438_v17, %v744_v39  ;;  %v749_v30 = vshll.u32 %v2438_v17, %v743_v32 }
  0xde   : > { %v491_v52 = vshrl.u32 %v473_v28, %v489_v19  ;;  %v494_v53 = vadd.s32 127, %v493_v60  ;;  %v750_v54 = vshrl.u32 %v2439_v20, %v744_v39  ;;  %v604_v12 = vmul.f32 %v603_v48, %v601_v36 }
  0xdf   : > { %v2758_v58 = vshrl.u32 %v686_v44, 30  ;;  %v752_v59 = vshll.u32 %v2439_v20, %v743_v32  ;;  %v753_v1 = vshrl.u32 %v2440_v22, %v744_v39  ;;  %v748_v5 = vor.u32 %v747_v49, %v746_v46 }
  0xe0   : > { %v492_v2 = vor.u32 %v491_v52, %v490_v42  ;;  %v495_v43 = vshll.u32 %v494_v53, 23  ;;  %v751_v62 = vor.u32 %v750_v54, %v749_v30  ;;  %vm523_vm8 = vcmp.lt.s32.totalorder %v2601_v41, 0 }
  0xe1   : > { %v688_v11 = vshll.u32 %v2758_v58, 30  ;;  %v754_v63 = vor.u32 %v753_v1, %v752_v59  ;;  %v755_v6 = vshll.u32 %v2440_v22, %v743_v32  ;;  %v756_v7 = vshrl.u32 %v2441_v24, %v744_v39 }
  0xe2   : > { %v496_v8 = vor.u32 4788187, %v495_v43  ;;  %v745_v9 = vshrl.u32 %v2437_v15, %v744_v39  ;;  %v758_v16 = vshll.u32 %v2441_v24, %v743_v32  ;;  %v759_v10 = vshrl.u32 %v2442_v31, %v744_v39 }
  0xe3   : > { %vm2771_vm9 = vcmp.le.f32.partialorder %v417_v50, 0.7853982  ;;  %v605_v21 = vxor.u32 2147483648, %v604_v12  ;;  %v499_v23 = vcvt.s32.f32 %v492_v2  ;;  %v2775_v55 = vsub.s32 %v685_v38, %v688_v11 }
  0xe4   : > { %v757_v4 = vor.u32 %v756_v7, %v755_v6  ;;  %v497_v26 = vand.u32 2147483647, %v496_v8  ;;  %v760_v27 = vor.u32 %v759_v10, %v758_v16  ;;  %vm761_vm10 = vcmp.lt.s32.totalorder %v742_v40, 1 }
  0xe5   : > { %vm764_vm11 = vcmp.lt.s32.totalorder %v742_v40, 4  ;;  %v691_v61 = vsub.s32 0, %v2775_v55  ;;  %vm762_vm12 = vcmp.lt.s32.totalorder %v742_v40, 2  ;;  %v769_v29 = vsel %vm761_vm10, %v748_v5, %v751_v62 }
  0xe6   : > { %v766_v28 = vsel %vm764_vm11, %v754_v63, 2102212464  ;;  %v500_v32 = vmul.f32 %v499_v23, %v497_v26  ;;  %vm763_vm13 = vcmp.lt.s32.totalorder %v742_v40, 3  ;;  %v770_v50 = vsel %vm764_vm11, %v757_v4, 920167782 }
  0xe7   : > { %v773_v33 = vsel %vm761_vm10, %v751_v62, %v754_v63  ;;  %v2085_v36 = vmin.u32 %v691_v61, %v2775_v55  ;;  %v765_v37 = vsel %vm761_vm10, %v745_v9, %v748_v5  ;;  %v771_v39 = vsel %vm763_vm13, %v754_v63, %v770_v50 }
  0xe8   : > { %v774_v38 = vsel %vm764_vm11, %v760_v27, 1326507024  ;;  %v501_v48 = vxor.u32 2147483648, %v500_v32  ;;  %v767_v19 = vsel %vm763_vm13, %v751_v62, %v766_v28  ;;  %v772_v60 = vsel %vm762_vm12, %v769_v29, %v771_v39 }
  0xe9   : > { %v775_v42 = vsel %vm763_vm13, %v757_v4, %v774_v38  ;;  %v693_v44 = vclz %v2085_v36  ;;  %v2782_v49 = vmul.u32.u64.low %v2747_v34, %v772_v60  ;;  %v2783_v52 = vmul.u32.u64.high %v2747_v34, %v772_v60, %v2782_v49 }
  0xea   : > { %v776_v46 = vsel %vm762_vm12, %v773_v33, %v775_v42  ;;  %v606_v53 = vsel %vm523_vm8, %v605_v21, %v604_v12  ;;  %v502_v30 = vsel %vm419_vm4, %v501_v48, %v500_v32  ;;  %v768_v2 = vsel %vm762_vm12, %v765_v37, %v767_v19 }
  0xeb   : > { %v2791_v54 = vmul.u32.u64.low %v2747_v34, %v776_v46  ;;  %v2792_v59 = vmul.u32.u64.high %v2747_v34, %v776_v46, %v2791_v54  ;;  %v2086_v1 = vadd.s32 4294967294, %v693_v44  ;;  %v505_v43 = vsel %vm2771_vm9, %v2605_v47, %v502_v30 }
  0xec   : > { %v506_v5 = vsel %vm2771_vm9, 0, %v2751_v35  ;;  %2323 = vcosq.f32 %v505_v43  ;;  %vm2803_vm14 = vcmp.le.f32.partialorder %v521_v45, 0.7853982  ;;  %v787_v62 = vadd.s32 1, %v2783_v52 }
  0xed   : > { %vm2087_vm15 = vcmp.lt.s32.totalorder %v2086_v1, 0  ;;  %2325 = vsinq.f32 %v505_v43  ;;  %v609_v40 = vsel %vm2803_vm14, %v2601_v41, %v606_v53  ;;  %v784_v63 = vmul.u32 %v2747_v34, %v768_v2 }
  0xee   : > { %v696_v11 = vsel %vm2087_vm15, 0, %v2086_v1  ;;  %vm786_vm0 = vc.u32 %v2792_v59, %v2782_v49  ;;  %v608_v45 = vsel %vm523_vm8, %v607_v25, %v2687_v51  ;;  %v510_v7 = vadd.s32 3, %v506_v5 }
  0xef   : > { %v701_v35 = vsub.s32 4294967266, %v696_v11  ;;  %v788_v6 = vsel %vm786_vm0, %v787_v62, %v2783_v52  ;;  %v697_v8 = vsub.s32 32, %v696_v11  ;;  %2327 = vcosq.f32 %v609_v40 }
  0xf0   : > { %v789_v9 = vadd.s32 %v788_v6, %v784_v63  ;;  %v610_v34 = vsel %vm2803_vm14, 0, %v608_v45  ;;  %2329 = vsinq.f32 %v609_v40  ;;  %v681_v10 = vadd.s32 %v2727_v3, %v2736_v14 }
  0xf1   : > { %v702_v16 = vadd.s32 127, %v701_v35  ;;  %v511_v23 = vand.u32 3, %v510_v7  ;;  %v614_v25 = vadd.s32 3, %v610_v34  ;;  %v698_v27 = vshll.u32 %v2775_v55, %v696_v11 }
  0xf2   : > { %v790_v18 = vadd.s32 536870912, %v789_v9  ;;  %v699_v4 = vshrl.u32 %v681_v10, %v697_v8  ;;  %vm509_vm6 = vweird.f32 %v2605_v47  ;;  %vm613_vm9 = vweird.f32 %v2601_v41 }
  0xf3   : > { %v703_v21 = vshll.u32 %v702_v16, 23  ;;  %vm516_vm2 = vcmp.eq.s32.totalorder %v511_v23, 2  ;;  %v615_v3 = vand.u32 3, %v614_v25  ;;  %vm513_vm3 = vcmp.eq.s32.totalorder %v511_v23, 0 }
  0xf4   : > { %v2824_v51 = vshrl.u32 %v790_v18, 30  ;;  %v700_v50 = vor.u32 %v699_v4, %v698_v27  ;;  %vm512_vm4 = vcmp.lt.s32.totalorder %v511_v23, 2  ;;  %v785_v47 = vadd.s32 %v2782_v49, %v2792_v59 }
  0xf5   : > { %v704_v61 = vor.u32 4788187, %v703_v21  ;;  %vm620_vm5 = vcmp.eq.s32.totalorder %v615_v3, 2  ;;  %vm616_vm7 = vcmp.lt.s32.totalorder %v615_v3, 2  ;;  %vm617_vm8 = vcmp.eq.s32.totalorder %v615_v3, 0 }
  0xf6   : > { %v2324_v26 = vpop.eup %2323  ;;  %v792_v28 = vshll.u32 %v2824_v51, 30  ;;  %v707_v42 = vcvt.s32.f32 %v700_v50  ;;  %vm627_vm11 = vcmp.lt.s32.totalorder %v2613_v56, 0  ;;  %vm2837_vm12 = vcmp.le.f32.partialorder %v625_v0, 0.7853982 }
  0xf7   : > { %v2326_v29 = vpop.eup %2325  ;;  %v517_v32 = vxor.u32 2147483648, %v2324_v26  ;;  %v705_v39 = vand.u32 2147483647, %v704_v61  ;;  %v711_v16 = vsub.s32 4, %v2758_v58  ;;  %v815_v21 = vsub.s32 4, %v2824_v51 }
  0xf8   : > { %v793_v33 = vsub.s32 %v789_v9, %v792_v28  ;;  %v514_v36 = vxor.u32 2147483648, %v2326_v29  ;;  %vm731_vm13 = vcmp.lt.s32.totalorder %v2628_v13, 0  ;;  %vm730_vm14 = vcmp.le.f32.partialorder %v729_v57, 0.7853982 }
  0xf9   : > { %v518_v14 = vsel %vm516_vm2, %v517_v32, %v2326_v29  ;;  %v2328_v37 = vpop.eup %2327  ;;  %v708_v53 = vmul.f32 %v707_v42, %v705_v39  ;;  %v712_v0 = vsel %vm627_vm11, %v711_v16, %v2758_v58 }
  0xfa   : > { %v795_v38 = vsub.s32 0, %v793_v33  ;;  %v515_v48 = vsel %vm513_vm3, %v2324_v26, %v514_v36  ;;  %v2330_v19 = vpop.eup %2329  ;;  %v621_v55 = vxor.u32 2147483648, %v2328_v37  ;;  %v714_v25 = vsel %vm2837_vm12, 0, %v712_v0 }
  0xfb   : > { %v519_v60 = vsel %vm512_vm4, %v515_v48, %v518_v14  ;;  %v618_v46 = vxor.u32 2147483648, %v2330_v19  ;;  %v709_v62 = vxor.u32 2147483648, %v708_v53  ;;  %v816_v26 = vsel %vm731_vm13, %v815_v21, %v2824_v51 }
  0xfc   : > { %v2089_v44 = vmin.u32 %v795_v38, %v793_v33  ;;  %v622_v52 = vsel %vm620_vm5, %v621_v55, %v2330_v19  ;;  %v520_v54 = vsel %vm509_vm6, nan, %v519_v60  ;;  %v718_v61 = vadd.s32 3, %v714_v25  ;;  %v1375_v25 = vld [vmem:[%s3516_s5] sm:$0xff] }
  0xfd   : > { %v619_v1 = vsel %vm617_vm8, %v2328_v37, %v618_v46  ;;  %v710_v45 = vsel %vm627_vm11, %v709_v62, %v708_v53  ;;  %v818_v28 = vsel %vm730_vm14, 0, %v816_v26  ;;  %vm717_vm6 = vweird.f32 %v2613_v56  ;;  %v835_v53 = vld [vmem:[%s3514_s3 + $0x10] sm:$0xff]  ;;  %2180 = vmatprep.mubr.msk.f32.mxu1 %vm861_vm1, %v1375_v25 }
  0xfe   : > { %v797_v30 = vclz %v2089_v44  ;;  %v623_v2 = vsel %vm616_vm7, %v619_v1, %v622_v52  ;;  %v713_v49 = vsel %vm2837_vm12, %v2613_v56, %v710_v45  ;;  %v822_v32 = vadd.s32 3, %v818_v28  ;;  %v834_v52 = vld [vmem:[%s3514_s3 + $0x8] sm:$0xff]  ;;  %v836_v56 = vld [vmem:[%s3514_s3 + $0x18] sm:$0xff] }
  0xff   : > { %v624_v5 = vsel %vm613_vm9, nan, %v623_v2  ;;  %2331 = vcosq.f32 %v713_v49  ;;  %v719_v50 = vand.u32 3, %v718_v61  ;;  %vm821_vm7 = vweird.f32 %v2628_v13 }
 0x100   : > { %v2090_v43 = vadd.s32 4294967294, %v797_v30  ;;  %v2197_v12 = vpack.c.bf16 %v624_v5, %v520_v54  ;;  %2333 = vsinq.f32 %v713_v49  ;;  %v823_v3 = vand.u32 3, %v822_v32  ;;  %v844_v30 = vpop.permute.xlu0 %843 }
 0x101   : > { %vm721_vm15 = vcmp.eq.s32.totalorder %v719_v50, 0  ;;  %vm724_vm0 = vcmp.eq.s32.totalorder %v719_v50, 2  ;;  %vm720_vm2 = vcmp.lt.s32.totalorder %v719_v50, 2 }
 0x102   : > { %vm2091_vm10 = vcmp.lt.s32.totalorder %v2090_v43, 0  ;;  %2198 = vmatprep.subr.bf16.mxu0 %v2197_v12  ;;  %vm828_vm3 = vcmp.eq.s32.totalorder %v823_v3, 2  ;;  %vm825_vm4 = vcmp.eq.s32.totalorder %v823_v3, 0  ;;  %vm824_vm5 = vcmp.lt.s32.totalorder %v823_v3, 2 }
 0x103   : > { %v800_v40 = vsel %vm2091_vm10, 0, %v2090_v43  ;;  %2200 = vmatpush3.bf16.msra.mxu0 %v2197_v12 }
 0x104   : > { %v801_v11 = vsub.s32 32, %v800_v40  ;;  %v805_v63 = vsub.s32 4294967266, %v800_v40  ;;  %v802_v41 = vshll.u32 %v793_v33, %v800_v40 }
 0x106   : > { %v803_v35 = vshrl.u32 %v785_v47, %v801_v11  ;;  %v806_v6 = vadd.s32 127, %v805_v63 }
 0x108   : > { %v804_v8 = vor.u32 %v803_v35, %v802_v41  ;;  %v807_v9 = vshll.u32 %v806_v6, 23  ;;  %v854_v6 = vpop.permute.xlu0 %853 }
 0x109   : > { %v2332_v29 = vpop.eup %2331 }
 0x10a   : > { %v808_v59 = vor.u32 4788187, %v807_v9  ;;  %v811_v10 = vcvt.s32.f32 %v804_v8  ;;  %v2334_v58 = vpop.eup %2333  ;;  %v725_v36 = vxor.u32 2147483648, %v2332_v29 }
 0x10b   : > { %v722_v33 = vxor.u32 2147483648, %v2334_v58 }
 0x10c   : > { %v809_v34 = vand.u32 2147483647, %v808_v59  ;;  %v726_v37 = vsel %vm724_vm0, %v725_v36, %v2334_v58 }
 0x10d   : > { %v723_v14 = vsel %vm721_vm15, %v2332_v29, %v722_v33 }
 0x10e   : > { %v812_v18 = vmul.f32 %v811_v10, %v809_v34  ;;  %v727_v48 = vsel %vm720_vm2, %v723_v14, %v726_v37 }
 0x10f   : > { %v728_v42 = vsel %vm717_vm6, nan, %v727_v48 }
 0x110   : > { %v813_v23 = vxor.u32 2147483648, %v812_v18 }
 0x112   : > { %v814_v4 = vsel %vm731_vm13, %v813_v23, %v812_v18 }
 0x113   : > { %v817_v27 = vsel %vm730_vm14, %v2628_v13, %v814_v4  ;;  %v849_v13 = vpop.permute.xlu1 %848 }
 0x114   : > { %2335 = vcosq.f32 %v817_v27 }
 0x115   : > { %2337 = vsinq.f32 %v817_v27 }
 0x117   : > { %v859_v62 = vpop.permute.xlu1 %858 }
 0x11e   : > { %v2336_v57 = vpop.eup %2335 }
 0x11f   : > { %v2338_v39 = vpop.eup %2337  ;;  %v829_v51 = vxor.u32 2147483648, %v2336_v57 }
 0x120   : > { %v826_v38 = vxor.u32 2147483648, %v2338_v39 }
 0x121   : > { %v830_v19 = vsel %vm828_vm3, %v829_v51, %v2338_v39 }
 0x122   : > { %v827_v60 = vsel %vm825_vm4, %v2336_v57, %v826_v38 }
 0x123   : > { %v831_v55 = vsel %vm824_vm5, %v827_v60, %v830_v19 }
 0x124   : > { %v832_v44 = vsel %vm821_vm7, nan, %v831_v55 }
 0x125   : > { %v2201_v46 = vpack.c.bf16 %v832_v44, %v728_v42 }
 0x127   : > { %2202 = vmatprep.subr.bf16.mxu0 %v2201_v46 }
 0x128   : > { %2204 = vmatpush3.bf16.msra.mxu0 %v2201_v46 }
 0x12b   : > { %2167 = vmatmul.mubr.msk.f32.vlgmr.msra.gmra.mrb[0].mxu0 %vm861_vm1, %v834_v52 }
 0x12c   : > { %2169 = vmatprep.mubr.msk.f32.mxu0 %vm861_vm1, %v835_v53 }
 0x12f   : > { %2170 = vmatmul.mubr.msk.f32.gmra.mrb[2].mxu0 %vm861_vm1, %v836_v56 }
 0x1fe   : > { %v2168_v54 = vpop.f32.mrb[0].mxu0 }
 0x1ff   : > { %v2870_v1 = vadd.f32 %v2168_v54, %v849_v13  ;;  %v940_v2 = vpop.f32.mrb[1].mxu0 }
 0x200   : > { %v2872_v43 = vadd.f32 %v940_v2, %v844_v30 }
 0x201   : > { %v1063_v5 = vand.u32 2147483647, %v2870_v1  ;;  %v1066_v12 = vand.u32 2139095040, %v2870_v1 }
 0x202   : > { %v959_v40 = vand.u32 2147483647, %v2872_v43  ;;  %v962_v47 = vand.u32 2139095040, %v2872_v43  ;;  %v2171_v11 = vpop.f32.mrb[2].mxu0 }
 0x203   : > { %v1067_v63 = vshrl.u32 %v1066_v12, 23  ;;  %v1070_v45 = vand.u32 8388607, %v1063_v5  ;;  %v2880_v41 = vadd.f32 %v2171_v11, %v859_v62  ;;  %v950_v35 = vpop.f32.mrb[3].mxu0 }
 0x204   : > { %v963_v7 = vshrl.u32 %v962_v47, 23  ;;  %v966_v8 = vand.u32 8388607, %v959_v40  ;;  %v2885_v59 = vadd.f32 %v950_v35, %v854_v6 }
 0x205   : > { %v2100_v9 = vadd.s32 4294967169, %v1067_v63  ;;  %v1271_v49 = vand.u32 2147483647, %v2880_v41  ;;  %v1071_v16 = vor.u32 8388608, %v1070_v45  ;;  %v1274_v10 = vand.u32 2139095040, %v2880_v41 }
 0x206   : > { %v2096_v34 = vadd.s32 4294967169, %v963_v7  ;;  %v967_v21 = vor.u32 8388608, %v966_v8  ;;  %v1167_v26 = vand.u32 2147483647, %v2885_v59  ;;  %v1170_v57 = vand.u32 2139095040, %v2885_v59 }
 0x207   : > { %v1073_v18 = vadd.s32 1, %v2100_v9  ;;  %v1275_v23 = vshrl.u32 %v1274_v10, 23  ;;  %v2890_v4 = vand.u32 8388607, %v1271_v49  ;;  %v2897_v61 = vshll.u32 %v1071_v16, 8 }
 0x208   : > { %v969_v0 = vadd.s32 1, %v2096_v34  ;;  %v2899_v50 = vshll.u32 %v967_v21, 8 }
 0x209   : > { %vm1074_vm8 = vcmp.gt.s32.totalorder %v1073_v18, 0  ;;  %v2108_v28 = vadd.s32 4294967169, %v1275_v23  ;;  %v1279_v3 = vor.u32 8388608, %v2890_v4 }
 0x20a   : > { %v1075_v27 = vsel %vm1074_vm8, %v1073_v18, 0  ;;  %vm970_vm9 = vcmp.gt.s32.totalorder %v969_v0, 0 }
 0x20b   : > { %v1076_v29 = vshrl.u32 %v1075_v27, 5  ;;  %v1077_v58 = vand.u32 31, %v1075_v27  ;;  %v971_v32 = vsel %vm970_vm9, %v969_v0, 0  ;;  %v2907_v51 = vadd.s32 1, %v2108_v28 }
 0x20c   : > { %v2901_v33 = vshrl.u32 %v971_v32, 5  ;;  %v973_v36 = vand.u32 31, %v971_v32 }
 0x20d   : > { %v1078_v14 = vsub.s32 32, %v1077_v58  ;;  %v1080_v37 = vshll.u32 %v2437_v15, %v1077_v58  ;;  %v1083_v39 = vshll.u32 %v2438_v17, %v1077_v58  ;;  %v1086_v38 = vshll.u32 %v2439_v20, %v1077_v58 }
 0x20e   : > { %v1089_v48 = vshll.u32 %v2440_v22, %v1077_v58  ;;  %v1092_v19 = vshll.u32 %v2441_v24, %v1077_v58  ;;  %vm1095_vm10 = vcmp.lt.s32.totalorder %v1076_v29, 1  ;;  %vm1096_vm11 = vcmp.lt.s32.totalorder %v1076_v29, 2 }
 0x20f   : > { %v1081_v60 = vshrl.u32 %v2438_v17, %v1078_v14  ;;  %v1084_v55 = vshrl.u32 %v2439_v20, %v1078_v14  ;;  %v1087_v42 = vshrl.u32 %v2440_v22, %v1078_v14  ;;  %v1079_v44 = vshrl.u32 %v2437_v15, %v1078_v14 }
 0x210   : > { %v1090_v46 = vshrl.u32 %v2441_v24, %v1078_v14  ;;  %v1093_v52 = vshrl.u32 %v2442_v31, %v1078_v14  ;;  %vm1097_vm12 = vcmp.lt.s32.totalorder %v1076_v29, 3  ;;  %v974_v30 = vsub.s32 32, %v973_v36 }
 0x211   : > { %v1082_v53 = vor.u32 %v1081_v60, %v1080_v37  ;;  %v1085_v56 = vor.u32 %v1084_v55, %v1083_v39  ;;  %v1088_v13 = vor.u32 %v1087_v42, %v1086_v38  ;;  %vm1098_vm13 = vcmp.lt.s32.totalorder %v1076_v29, 4 }
 0x212   : > { %v1091_v54 = vor.u32 %v1090_v46, %v1089_v48  ;;  %v1094_v2 = vor.u32 %v1093_v52, %v1092_v19  ;;  %v976_v12 = vshll.u32 %v2437_v15, %v973_v36  ;;  %v979_v7 = vshll.u32 %v2438_v17, %v973_v36 }
 0x213   : > { %v1099_v62 = vsel %vm1095_vm10, %v1079_v44, %v1082_v53  ;;  %v1100_v47 = vsel %vm1098_vm13, %v1088_v13, 2102212464  ;;  %v1103_v11 = vsel %vm1095_vm10, %v1082_v53, %v1085_v56  ;;  %v1107_v63 = vsel %vm1095_vm10, %v1085_v56, %v1088_v13 }
 0x214   : > { %v1101_v45 = vsel %vm1097_vm12, %v1085_v56, %v1100_v47  ;;  %v1104_v35 = vsel %vm1098_vm13, %v1091_v54, 920167782  ;;  %v1108_v6 = vsel %vm1098_vm13, %v1094_v2, 1326507024  ;;  %v975_v16 = vshrl.u32 %v2437_v15, %v974_v30 }
 0x215   : > { %v1105_v8 = vsel %vm1097_vm12, %v1088_v13, %v1104_v35  ;;  %v1109_v9 = vsel %vm1097_vm12, %v1091_v54, %v1108_v6  ;;  %v977_v34 = vshrl.u32 %v2438_v17, %v974_v30  ;;  %v1102_v10 = vsel %vm1096_vm11, %v1099_v62, %v1101_v45 }
 0x216   : > { %v1106_v18 = vsel %vm1096_vm11, %v1103_v11, %v1105_v8  ;;  %v1110_v21 = vsel %vm1096_vm11, %v1107_v63, %v1109_v9  ;;  %v980_v0 = vshrl.u32 %v2439_v20, %v974_v30  ;;  %v982_v14 = vshll.u32 %v2439_v20, %v973_v36 }
 0x217   : > { %v2933_v23 = vmul.u32.u64.low %v2897_v61, %v1110_v21  ;;  %v2934_v25 = vmul.u32.u64.high %v2897_v61, %v1110_v21, %v2933_v23  ;;  %v2937_v27 = vmul.u32.u64.low %v2897_v61, %v1106_v18  ;;  %v2938_v28 = vmul.u32.u64.high %v2897_v61, %v1106_v18, %v2937_v27 }
 0x218   : > { %v978_v58 = vor.u32 %v977_v34, %v976_v12  ;;  %v981_v32 = vor.u32 %v980_v0, %v979_v7  ;;  %v983_v37 = vshrl.u32 %v2440_v22, %v974_v30  ;;  %v1118_v29 = vmul.u32 %v2897_v61, %v1102_v10 }
 0x219   : > { %v985_v39 = vshll.u32 %v2440_v22, %v973_v36  ;;  %v986_v38 = vshrl.u32 %v2441_v24, %v974_v30  ;;  %v989_v48 = vshrl.u32 %v2442_v31, %v974_v30  ;;  %v988_v60 = vshll.u32 %v2441_v24, %v973_v36 }
 0x21a   : > { %v984_v19 = vor.u32 %v983_v37, %v982_v14  ;;  %vm991_vm14 = vcmp.lt.s32.totalorder %v2901_v33, 1  ;;  %vm992_vm15 = vcmp.lt.s32.totalorder %v2901_v33, 2  ;;  %vm1120_vm0 = vc.u32 %v2934_v25, %v2937_v27 }
 0x21b   : > { %v1121_v55 = vadd.s32 1, %v2938_v28  ;;  %v987_v42 = vor.u32 %v986_v38, %v985_v39  ;;  %vm993_vm2 = vcmp.lt.s32.totalorder %v2901_v33, 3  ;;  %v990_v61 = vor.u32 %v989_v48, %v988_v60 }
 0x21c   : > { %vm994_vm3 = vcmp.lt.s32.totalorder %v2901_v33, 4  ;;  %v995_v44 = vsel %vm991_vm14, %v975_v16, %v978_v58  ;;  %v999_v46 = vsel %vm991_vm14, %v978_v58, %v981_v32  ;;  %v1003_v56 = vsel %vm991_vm14, %v981_v32, %v984_v19 }
 0x21d   : > { %v1122_v52 = vsel %vm1120_vm0, %v1121_v55, %v2938_v28  ;;  %v996_v36 = vsel %vm994_vm3, %v984_v19, 2102212464  ;;  %v1000_v53 = vsel %vm994_vm3, %v987_v42, 920167782  ;;  %v1004_v2 = vsel %vm994_vm3, %v990_v61, 1326507024 }
 0x21e   : > { %v1123_v13 = vadd.s32 %v1122_v52, %v1118_v29  ;;  %v997_v30 = vsel %vm993_vm2, %v981_v32, %v996_v36  ;;  %v1001_v54 = vsel %vm993_vm2, %v984_v19, %v1000_v53  ;;  %v1005_v47 = vsel %vm993_vm2, %v987_v42, %v1004_v2 }
 0x21f   : > { %v998_v12 = vsel %vm992_vm15, %v995_v44, %v997_v30  ;;  %v1002_v62 = vsel %vm992_vm15, %v999_v46, %v1001_v54  ;;  %vm1282_vm4 = vcmp.gt.s32.totalorder %v2907_v51, 0  ;;  %v1006_v63 = vsel %vm992_vm15, %v1003_v56, %v1005_v47 }
 0x220   : > { %v1124_v11 = vadd.s32 536870912, %v1123_v13  ;;  %v2964_v45 = vmul.u32.u64.low %v2899_v50, %v1002_v62  ;;  %v2965_v35 = vmul.u32.u64.high %v2899_v50, %v1002_v62, %v2964_v45  ;;  %v1283_v8 = vsel %vm1282_vm4, %v2907_v51, 0 }
 0x221   : > { %v2969_v6 = vmul.u32.u64.low %v2899_v50, %v1006_v63  ;;  %v2970_v7 = vmul.u32.u64.high %v2899_v50, %v1006_v63, %v2969_v6  ;;  %v1171_v9 = vshrl.u32 %v1170_v57, 23  ;;  %v1285_v34 = vand.u32 31, %v1283_v8 }
 0x222   : > { %v2975_v16 = vshrl.u32 %v1124_v11, 30  ;;  %v1014_v33 = vmul.u32 %v2899_v50, %v998_v12  ;;  %v2980_v10 = vshll.u32 %v1279_v3, 8  ;;  %v2984_v18 = vand.u32 8388607, %v1167_v26 }
 0x223   : > { %v1017_v51 = vadd.s32 1, %v2965_v35  ;;  %v1284_v0 = vshrl.u32 %v1283_v8, 5  ;;  %v1286_v23 = vsub.s32 32, %v1285_v34  ;;  %vm1016_vm5 = vc.u32 %v2970_v7, %v2964_v45 }
 0x224   : > { %v1126_v21 = vshll.u32 %v2975_v16, 30  ;;  %v1288_v57 = vshll.u32 %v2437_v15, %v1285_v34  ;;  %v1291_v50 = vshll.u32 %v2438_v17, %v1285_v34  ;;  %v2104_v4 = vadd.s32 4294967169, %v1171_v9 }
 0x225   : > { %v1018_v28 = vsel %vm1016_vm5, %v1017_v51, %v2965_v35  ;;  %v1289_v58 = vshrl.u32 %v2438_v17, %v1286_v23  ;;  %v1294_v32 = vshll.u32 %v2439_v20, %v1285_v34  ;;  %v1292_v37 = vshrl.u32 %v2439_v20, %v1286_v23 }
 0x226   : > { %v2992_v3 = vsub.s32 %v1123_v13, %v1126_v21  ;;  %v1019_v14 = vadd.s32 %v1018_v28, %v1014_v33  ;;  %v1295_v29 = vshrl.u32 %v2440_v22, %v1286_v23  ;;  %v1297_v39 = vshll.u32 %v2440_v22, %v1285_v34 }
 0x227   : > { %v1290_v48 = vor.u32 %v1289_v58, %v1288_v57  ;;  %v1298_v19 = vshrl.u32 %v2441_v24, %v1286_v23  ;;  %v1300_v60 = vshll.u32 %v2441_v24, %v1285_v34  ;;  %v1293_v42 = vor.u32 %v1292_v37, %v1291_v50 }
 0x228   : > { %v1129_v38 = vsub.s32 0, %v2992_v3  ;;  %v1020_v55 = vadd.s32 536870912, %v1019_v14  ;;  %v1296_v61 = vor.u32 %v1295_v29, %v1294_v32  ;;  %v1301_v44 = vshrl.u32 %v2442_v31, %v1286_v23 }
 0x229   : > { %v1287_v52 = vshrl.u32 %v2437_v15, %v1286_v23  ;;  %v1299_v36 = vor.u32 %v1298_v19, %v1297_v39  ;;  %vm1303_vm6 = vcmp.lt.s32.totalorder %v1284_v0, 1  ;;  %vm1305_vm7 = vcmp.lt.s32.totalorder %v1284_v0, 3 }
 0x22a   : > { %v2101_v46 = vmin.u32 %v1129_v38, %v2992_v3  ;;  %v1021_v53 = vshrl.u32 %v1020_v55, 30  ;;  %v1302_v56 = vor.u32 %v1301_v44, %v1300_v60  ;;  %vm1306_vm8 = vcmp.lt.s32.totalorder %v1284_v0, 4 }
 0x22b   : > { %v1307_v30 = vsel %vm1303_vm6, %v1287_v52, %v1290_v48  ;;  %v1308_v54 = vsel %vm1306_vm8, %v1296_v61, 2102212464  ;;  %v1311_v2 = vsel %vm1303_vm6, %v1290_v48, %v1293_v42  ;;  %v1312_v47 = vsel %vm1306_vm8, %v1299_v36, 920167782 }
 0x22c   : > { %v1131_v13 = vclz %v2101_v46  ;;  %v1022_v12 = vshll.u32 %v1021_v53, 30  ;;  %v1309_v62 = vsel %vm1305_vm7, %v1293_v42, %v1308_v54  ;;  %v1315_v11 = vsel %vm1303_vm6, %v1293_v42, %v1296_v61 }
 0x22d   : > { %vm1304_vm9 = vcmp.lt.s32.totalorder %v1284_v0, 2  ;;  %v1313_v35 = vsel %vm1305_vm7, %v1296_v61, %v1312_v47  ;;  %v1316_v6 = vsel %vm1306_vm8, %v1302_v56, 1326507024  ;;  %v1119_v32 = vadd.s32 %v2937_v27, %v2934_v25 }
 0x22e   : > { %v2102_v63 = vadd.s32 4294967294, %v1131_v13  ;;  %v3008_v8 = vsub.s32 %v1019_v14, %v1022_v12  ;;  %v1310_v9 = vsel %vm1304_vm9, %v1307_v30, %v1309_v62  ;;  %v1314_v34 = vsel %vm1304_vm9, %v1311_v2, %v1313_v35 }
 0x22f   : > { %v1317_v33 = vsel %vm1305_vm7, %v1299_v36, %v1316_v6  ;;  %v3012_v51 = vmul.u32.u64.low %v2980_v10, %v1314_v34  ;;  %v3013_v23 = vmul.u32.u64.high %v2980_v10, %v1314_v34, %v3012_v51  ;;  %v1177_v37 = vadd.s32 1, %v2104_v4 }
 0x230   : > { %vm2103_vm10 = vcmp.lt.s32.totalorder %v2102_v63, 0  ;;  %v1318_v21 = vsel %vm1304_vm9, %v1315_v11, %v1317_v33  ;;  %v1025_v50 = vsub.s32 0, %v3008_v8  ;;  %v1326_v38 = vmul.u32 %v2980_v10, %v1310_v9 }
 0x231   : > { %v1134_v57 = vsel %vm2103_vm10, 0, %v2102_v63  ;;  %v3018_v28 = vmul.u32.u64.low %v2980_v10, %v1318_v21  ;;  %v3019_v58 = vmul.u32.u64.high %v2980_v10, %v1318_v21, %v3018_v28  ;;  %v1175_v48 = vor.u32 8388608, %v2984_v18 }
 0x232   : > { %v1135_v14 = vsub.s32 32, %v1134_v57  ;;  %v1139_v0 = vsub.s32 4294967266, %v1134_v57  ;;  %v1136_v29 = vshll.u32 %v2992_v3, %v1134_v57  ;;  %v2097_v39 = vmin.u32 %v1025_v50, %v3008_v8 }
 0x233   : > { %v1329_v55 = vadd.s32 1, %v3013_v23  ;;  %vm1178_vm11 = vcmp.gt.s32.totalorder %v1177_v37, 0  ;;  %vm1328_vm12 = vc.u32 %v3019_v58, %v3012_v51  ;;  %v1045_v27 = vsub.s32 4, %v1021_v53 }
 0x234   : > { %v1137_v19 = vshrl.u32 %v1119_v32, %v1135_v14  ;;  %v1140_v60 = vadd.s32 127, %v1139_v0  ;;  %v1027_v42 = vclz %v2097_v39  ;;  %v1179_v25 = vsel %vm1178_vm11, %v1177_v37, 0 }
 0x235   : > { %vm961_vm13 = vcmp.lt.s32.totalorder %v2872_v43, 0  ;;  %v1330_v3 = vsel %vm1328_vm12, %v1329_v55, %v3013_v23  ;;  %v1015_v10 = vadd.s32 %v2964_v45, %v2970_v7  ;;  %v1181_v46 = vand.u32 31, %v1179_v25 }
 0x236   : > { %v1138_v4 = vor.u32 %v1137_v19, %v1136_v29  ;;  %v1141_v61 = vshll.u32 %v1140_v60, 23  ;;  %v2098_v18 = vadd.s32 4294967294, %v1027_v42  ;;  %v1331_v44 = vadd.s32 %v1330_v3, %v1326_v38 }
 0x237   : > { %v3034_v36 = vshrl.u32 %v1179_v25, 5  ;;  %v3036_v56 = vshll.u32 %v1175_v48, 8  ;;  %v1149_v13 = vsub.s32 4, %v2975_v16  ;;  %v1182_v54 = vsub.s32 32, %v1181_v46 }
 0x238   : > { %v1142_v52 = vor.u32 4788187, %v1141_v61  ;;  %vm2099_vm14 = vcmp.lt.s32.totalorder %v2098_v18, 0  ;;  %v1332_v30 = vadd.s32 536870912, %v1331_v44  ;;  %v3041_v2 = vsel %vm961_vm13, %v1045_v27, %v1021_v53 }
 0x239   : > { %v1145_v62 = vcvt.s32.f32 %v1138_v4  ;;  %v1030_v45 = vsel %vm2099_vm14, 0, %v2098_v18  ;;  %v1184_v7 = vshll.u32 %v2437_v15, %v1181_v46  ;;  %v1187_v35 = vshll.u32 %v2438_v17, %v1181_v46 }
 0x23a   : > { %v1143_v12 = vand.u32 2147483647, %v1142_v52  ;;  %v1031_v47 = vsub.s32 32, %v1030_v45  ;;  %v1035_v11 = vsub.s32 4294967266, %v1030_v45  ;;  %v3044_v63 = vshrl.u32 %v1332_v30, 30 }
 0x23b   : > { %v1032_v9 = vshll.u32 %v3008_v8, %v1030_v45  ;;  %v1185_v34 = vshrl.u32 %v2438_v17, %v1182_v54  ;;  %v1188_v33 = vshrl.u32 %v2439_v20, %v1182_v54  ;;  %vm1065_vm15 = vcmp.lt.s32.totalorder %v2870_v1, 0 }
 0x23c   : > { %v1146_v6 = vmul.f32 %v1145_v62, %v1143_v12  ;;  %v1033_v53 = vshrl.u32 %v1015_v10, %v1031_v47  ;;  %v1036_v21 = vadd.s32 127, %v1035_v11  ;;  %v1334_v23 = vshll.u32 %v3044_v63, 30 }
 0x23d   : > { %v1191_v57 = vshrl.u32 %v2440_v22, %v1182_v54  ;;  %v1186_v50 = vor.u32 %v1185_v34, %v1184_v7  ;;  %v1189_v28 = vor.u32 %v1188_v33, %v1187_v35  ;;  %v1190_v32 = vshll.u32 %v2439_v20, %v1181_v46 }
 0x23e   : > { %vm1199_vm0 = vcmp.lt.s32.totalorder %v3034_v36, 1  ;;  %v1034_v14 = vor.u32 %v1033_v53, %v1032_v9  ;;  %v1037_v8 = vshll.u32 %v1036_v21, 23  ;;  %v3055_v0 = vsub.s32 %v1331_v44, %v1334_v23 }
 0x23f   : > { %v1193_v37 = vshll.u32 %v2440_v22, %v1181_v46  ;;  %v1192_v29 = vor.u32 %v1191_v57, %v1190_v32  ;;  %v1194_v39 = vshrl.u32 %v2441_v24, %v1182_v54  ;;  %v1196_v38 = vshll.u32 %v2441_v24, %v1181_v46 }
 0x240   : > { %v1197_v48 = vshrl.u32 %v2442_v31, %v1182_v54  ;;  %v1147_v19 = vxor.u32 2147483648, %v1146_v6  ;;  %v1038_v60 = vor.u32 4788187, %v1037_v8  ;;  %v1337_v55 = vsub.s32 0, %v3055_v0 }
 0x241   : > { %v1183_v42 = vshrl.u32 %v2437_v15, %v1182_v54  ;;  %v1041_v25 = vcvt.s32.f32 %v1034_v14  ;;  %v1195_v27 = vor.u32 %v1194_v39, %v1193_v37  ;;  %vm1201_vm2 = vcmp.lt.s32.totalorder %v3034_v36, 3 }
 0x242   : > { %v1198_v4 = vor.u32 %v1197_v48, %v1196_v38  ;;  %v1039_v61 = vand.u32 2147483647, %v1038_v60  ;;  %v2109_v3 = vmin.u32 %v1337_v55, %v3055_v0  ;;  %vm1202_vm3 = vcmp.lt.s32.totalorder %v3034_v36, 4 }
 0x243   : > { %v1207_v10 = vsel %vm1199_vm0, %v1186_v50, %v1189_v28  ;;  %v1204_v18 = vsel %vm1202_vm3, %v1192_v29, 2102212464  ;;  %v1208_v44 = vsel %vm1202_vm3, %v1195_v27, 920167782  ;;  %v1211_v46 = vsel %vm1199_vm0, %v1189_v28, %v1192_v29 }
 0x244   : > { %v1212_v52 = vsel %vm1202_vm3, %v1198_v4, 1326507024  ;;  %v1042_v30 = vmul.f32 %v1041_v25, %v1039_v61  ;;  %v1339_v54 = vclz %v2109_v3  ;;  %vm1200_vm4 = vcmp.lt.s32.totalorder %v3034_v36, 2 }
 0x245   : > { %v1209_v12 = vsel %vm1201_vm2, %v1192_v29, %v1208_v44  ;;  %v1148_v62 = vsel %vm1065_vm15, %v1147_v19, %v1146_v6  ;;  %v1203_v45 = vsel %vm1199_vm0, %v1183_v42, %v1186_v50  ;;  %v1213_v47 = vsel %vm1201_vm2, %v1195_v27, %v1212_v52 }
 0x246   : > { %v1210_v7 = vsel %vm1200_vm4, %v1207_v10, %v1209_v12  ;;  %v1043_v11 = vxor.u32 2147483648, %v1042_v30  ;;  %v2110_v35 = vadd.s32 4294967294, %v1339_v54  ;;  %v1205_v9 = vsel %vm1201_vm2, %v1189_v28, %v1204_v18 }
 0x247   : > { %v1214_v34 = vsel %vm1200_vm4, %v1211_v46, %v1213_v47  ;;  %v3090_v53 = vmul.u32.u64.low %v3036_v56, %v1210_v7  ;;  %v3091_v21 = vmul.u32.u64.high %v3036_v56, %v1210_v7, %v3090_v53  ;;  %vm3098_vm6 = vcmp.le.f32.partialorder %v959_v40, 0.7853982 }
 0x248   : > { %v3086_v33 = vmul.u32.u64.low %v3036_v56, %v1214_v34  ;;  %v3087_v6 = vmul.u32.u64.high %v3036_v56, %v1214_v34, %v3086_v33  ;;  %v1044_v23 = vsel %vm961_vm13, %v1043_v11, %v1042_v30  ;;  %vm2111_vm5 = vcmp.lt.s32.totalorder %v2110_v35, 0 }
 0x249   : > { %v1342_v50 = vsel %vm2111_vm5, 0, %v2110_v35  ;;  %v1206_v28 = vsel %vm1200_vm4, %v1203_v45, %v1205_v9  ;;  %v1047_v32 = vsel %vm3098_vm6, %v2872_v43, %v1044_v23  ;;  %vm3109_vm7 = vcmp.le.f32.partialorder %v1063_v5, 0.7853982 }
 0x24a   : > { %v1347_v8 = vsub.s32 4294967266, %v1342_v50  ;;  %v1048_v40 = vsel %vm3098_vm6, 0, %v3041_v2  ;;  %2339 = vcosq.f32 %v1047_v32  ;;  %v1151_v36 = vsel %vm3109_vm7, %v2870_v1, %v1148_v62 }
 0x24b   : > { %vm1224_vm8 = vc.u32 %v3087_v6, %v3090_v53  ;;  %v1225_v37 = vadd.s32 1, %v3091_v21  ;;  %2341 = vsinq.f32 %v1047_v32  ;;  %v1150_v5 = vsel %vm1065_vm15, %v1149_v13, %v2975_v16 }
 0x24c   : > { %v1343_v29 = vsub.s32 32, %v1342_v50  ;;  %v1348_v39 = vadd.s32 127, %v1347_v8  ;;  %v1222_v2 = vmul.u32 %v3036_v56, %v1206_v28  ;;  %v1327_v38 = vadd.s32 %v3012_v51, %v3019_v58 }
 0x24d   : > { %v1226_v48 = vsel %vm1224_vm8, %v1225_v37, %v3091_v21  ;;  %v1052_v19 = vadd.s32 3, %v1048_v40  ;;  %2343 = vcosq.f32 %v1151_v36  ;;  %v1152_v42 = vsel %vm3109_vm7, 0, %v1150_v5 }
 0x24e   : > { %v1349_v60 = vshll.u32 %v1348_v39, 23  ;;  %v1227_v55 = vadd.s32 %v1226_v48, %v1222_v2  ;;  %2345 = vsinq.f32 %v1151_v36  ;;  %v1345_v25 = vshrl.u32 %v1327_v38, %v1343_v29 }
 0x24f   : > { %v1156_v16 = vadd.s32 3, %v1152_v42  ;;  %v1344_v13 = vshll.u32 %v3055_v0, %v1342_v50  ;;  %v1053_v61 = vand.u32 3, %v1052_v19  ;;  %vm1051_vm12 = vweird.f32 %v2872_v43 }
 0x250   : > { %v1228_v27 = vadd.s32 536870912, %v1227_v55  ;;  %v1350_v4 = vor.u32 4788187, %v1349_v60  ;;  %vm1155_vm0 = vweird.f32 %v2870_v1  ;;  %vm1273_vm3 = vcmp.lt.s32.totalorder %v2880_v41, 0 }
 0x251   : > { %v1346_v58 = vor.u32 %v1345_v25, %v1344_v13  ;;  %v1157_v44 = vand.u32 3, %v1156_v16  ;;  %vm1058_vm9 = vcmp.eq.s32.totalorder %v1053_v61, 2  ;;  %vm1054_vm10 = vcmp.lt.s32.totalorder %v1053_v61, 2 }
 0x252   : > { %v3134_v56 = vshrl.u32 %v1228_v27, 30  ;;  %v1351_v46 = vand.u32 2147483647, %v1350_v4  ;;  %vm1055_vm11 = vcmp.eq.s32.totalorder %v1053_v61, 0  ;;  %v1223_v36 = vadd.s32 %v3090_v53, %v3087_v6 }
 0x253   : > { %v1353_v62 = vcvt.s32.f32 %v1346_v58  ;;  %vm1162_vm13 = vcmp.eq.s32.totalorder %v1157_v44, 2  ;;  %vm1159_vm14 = vcmp.eq.s32.totalorder %v1157_v44, 0  ;;  %vm1158_vm15 = vcmp.lt.s32.totalorder %v1157_v44, 2 }
 0x254   : > { %v2340_v51 = vpop.eup %2339  ;;  %v1230_v3 = vshll.u32 %v3134_v56, 30  ;;  %vm3146_vm4 = vcmp.le.f32.partialorder %v1271_v49, 0.7853982  ;;  %v1357_v60 = vsub.s32 4, %v3044_v63  ;;  %v1253_v25 = vsub.s32 4, %v3134_v56 }
 0x255   : > { %v2342_v10 = vpop.eup %2341  ;;  %v1059_v18 = vxor.u32 2147483648, %v2340_v51  ;;  %v1354_v9 = vmul.f32 %v1353_v62, %v1351_v46  ;;  %vm1169_vm5 = vcmp.lt.s32.totalorder %v2885_v59, 0  ;;  %vm1168_vm6 = vcmp.le.f32.partialorder %v1167_v26, 0.7853982 }
 0x256   : > { %v1231_v52 = vsub.s32 %v1227_v55, %v1230_v3  ;;  %v1056_v30 = vxor.u32 2147483648, %v2342_v10  ;;  %v1358_v49 = vsel %vm1273_vm3, %v1357_v60, %v3044_v63  ;;  %v1254_v4 = vsel %vm1169_vm5, %v1253_v25, %v3134_v56 }
 0x257   : > { %v2344_v54 = vpop.eup %2343  ;;  %v1060_v12 = vsel %vm1058_vm9, %v1059_v18, %v2342_v10  ;;  %v1355_v32 = vxor.u32 2147483648, %v1354_v9  ;;  %v1360_v16 = vsel %vm3146_vm4, 0, %v1358_v49  ;;  %v1256_v3 = vsel %vm1168_vm6, 0, %v1254_v4 }
 0x258   : > { %v2346_v0 = vpop.eup %2345  ;;  %v1233_v45 = vsub.s32 0, %v1231_v52  ;;  %v1057_v7 = vsel %vm1055_vm11, %v2340_v51, %v1056_v30  ;;  %v1163_v47 = vxor.u32 2147483648, %v2344_v54  ;;  %v1364_v51 = vadd.s32 3, %v1360_v16 }
 0x259   : > { %v1061_v11 = vsel %vm1054_vm10, %v1057_v7, %v1060_v12  ;;  %v1160_v35 = vxor.u32 2147483648, %v2346_v0  ;;  %v1356_v40 = vsel %vm1273_vm3, %v1355_v32, %v1354_v9  ;;  %v1260_v18 = vadd.s32 3, %v1256_v3 }
 0x25a   : > { %v2105_v34 = vmin.u32 %v1233_v45, %v1231_v52  ;;  %v1164_v33 = vsel %vm1162_vm13, %v1163_v47, %v2346_v0  ;;  %v1062_v21 = vsel %vm1051_vm12, nan, %v1061_v11  ;;  %v1359_v38 = vsel %vm3146_vm4, %v2880_v41, %v1356_v40 }
 0x25b   : > { %v1161_v23 = vsel %vm1159_vm14, %v2344_v54, %v1160_v35  ;;  %2347 = vcosq.f32 %v1359_v38  ;;  %v1365_v10 = vand.u32 3, %v1364_v51  ;;  %vm1363_vm12 = vweird.f32 %v2880_v41  ;;  %v1378_v41 = vld [vmem:[%s3516_s5 + $0x18] sm:$0xff] }
 0x25c   : > { %v1235_v57 = vclz %v2105_v34  ;;  %v1165_v50 = vsel %vm1158_vm15, %v1161_v23, %v1164_v33  ;;  %2349 = vsinq.f32 %v1359_v38  ;;  %vm1259_vm14 = vweird.f32 %v2885_v59  ;;  %v1376_v34 = vld [vmem:[%s3516_s5 + $0x8] sm:$0xff]  ;;  %v1377_v33 = vld [vmem:[%s3516_s5 + $0x10] sm:$0xff] }
 0x25d   : > { %v1166_v28 = vsel %vm1155_vm0, nan, %v1165_v50  ;;  %vm1367_vm7 = vcmp.eq.s32.totalorder %v1365_v10, 0  ;;  %vm1370_vm8 = vcmp.eq.s32.totalorder %v1365_v10, 2  ;;  %vm1366_vm9 = vcmp.lt.s32.totalorder %v1365_v10, 2 }
 0x25e   : > { %v2106_v14 = vadd.s32 4294967294, %v1235_v57  ;;  %v2205_v8 = vpack.c.bf16 %v1166_v28, %v1062_v21  ;;  %v1391_v21 = vpop.permute.xlu1 %1390  ;;  %v1386_v57 = vpop.permute.xlu0 %1385 }
 0x260   : > { %vm2107_vm2 = vcmp.lt.s32.totalorder %v2106_v14, 0  ;;  %2206 = vmatprep.subr.bf16.mxu1 %v2205_v8 }
 0x261   : > { %v1238_v43 = vsel %vm2107_vm2, 0, %v2106_v14  ;;  %2208 = vmatpush3.bf16.msra.mxu1 %v2205_v8 }
 0x262   : > { %v1239_v37 = vsub.s32 32, %v1238_v43  ;;  %v1243_v5 = vsub.s32 4294967266, %v1238_v43  ;;  %v1240_v29 = vshll.u32 %v1231_v52, %v1238_v43  ;;  %v1261_v52 = vand.u32 3, %v1260_v18  ;;  %v1401_v43 = vpop.permute.xlu1 %1400 }
 0x264   : > { %v1241_v39 = vshrl.u32 %v1223_v36, %v1239_v37  ;;  %v1244_v2 = vadd.s32 127, %v1243_v5  ;;  %vm1266_vm10 = vcmp.eq.s32.totalorder %v1261_v52, 2  ;;  %vm1263_vm11 = vcmp.eq.s32.totalorder %v1261_v52, 0 }
 0x265   : > { %v2348_v58 = vpop.eup %2347  ;;  %vm1262_vm13 = vcmp.lt.s32.totalorder %v1261_v52, 2 }
 0x266   : > { %v1242_v48 = vor.u32 %v1241_v39, %v1240_v29  ;;  %v1245_v19 = vshll.u32 %v1244_v2, 23  ;;  %v2350_v63 = vpop.eup %2349  ;;  %v1371_v46 = vxor.u32 2147483648, %v2348_v58 }
 0x267   : > { %v1368_v44 = vxor.u32 2147483648, %v2350_v63 }
 0x268   : > { %v1246_v6 = vor.u32 4788187, %v1245_v19  ;;  %v1249_v55 = vcvt.s32.f32 %v1242_v48  ;;  %v1372_v26 = vsel %vm1370_vm8, %v1371_v46, %v2350_v63  ;;  %v1396_v19 = vpop.permute.xlu0 %1395 }
 0x269   : > { %v1369_v30 = vsel %vm1367_vm7, %v2348_v58, %v1368_v44 }
 0x26a   : > { %v1247_v53 = vand.u32 2147483647, %v1246_v6  ;;  %v1373_v0 = vsel %vm1366_vm9, %v1369_v30, %v1372_v26 }
 0x26b   : > { %v1374_v47 = vsel %vm1363_vm12, nan, %v1373_v0 }
 0x26c   : > { %v1250_v42 = vmul.f32 %v1249_v55, %v1247_v53 }
 0x26e   : > { %v1251_v27 = vxor.u32 2147483648, %v1250_v42 }
 0x270   : > { %v1252_v13 = vsel %vm1169_vm5, %v1251_v27, %v1250_v42 }
 0x271   : > { %v1255_v61 = vsel %vm1168_vm6, %v2885_v59, %v1252_v13  ;;  %v2443_v59 = vmov 0.0|0.0  }
 0x272   : > { %2351 = vcosq.f32 %v1255_v61  ;;  %2213 = vmatprep.subr.bf16.mxu0 %v2443_v59 }
 0x273   : > { %2353 = vsinq.f32 %v1255_v61 }
 0x27c   : > { %v2352_v54 = vpop.eup %2351 }
 0x27d   : > { %v2354_v56 = vpop.eup %2353  ;;  %v1267_v12 = vxor.u32 2147483648, %v2352_v54 }
 0x27e   : > { %v1264_v62 = vxor.u32 2147483648, %v2354_v56 }
 0x27f   : > { %v1268_v45 = vsel %vm1266_vm10, %v1267_v12, %v2354_v56 }
 0x280   : > { %v1265_v7 = vsel %vm1263_vm11, %v2352_v54, %v1264_v62 }
 0x281   : > { %v1269_v11 = vsel %vm1262_vm13, %v1265_v7, %v1268_v45 }
 0x282   : > { %v1270_v35 = vsel %vm1259_vm14, nan, %v1269_v11 }
 0x283   : > { %v2209_v9 = vpack.c.bf16 %v1374_v47, %v1270_v35 }
 0x285   : > { %2210 = vmatprep.subr.bf16.mxu1 %v2209_v9 }
 0x286   : > { %2212 = vmatpush3.bf16.msra.mxu1 %v2209_v9 }
 0x289   : > { %2181 = vmatmul.mubr.msk.f32.vlgmr.msra.gmra.mrb[0].mxu1 %vm861_vm1, %v1376_v34 }
 0x28a   : > { %2183 = vmatprep.mubr.msk.f32.mxu1 %vm861_vm1, %v1377_v33 }
 0x28d   : > { %2184 = vmatmul.mubr.msk.f32.gmra.mrb[2].mxu1 %vm861_vm1, %v1378_v41 }
 0x35c   : > { %v2182_v23 = vpop.f32.mrb[0].mxu1 }
 0x35d   : > { %v3180_v50 = vadd.f32 %v2182_v23, %v1391_v21  ;;  %v1481_v28 = vpop.f32.mrb[1].mxu1 }
 0x35e   : > { %v3182_v32 = vadd.f32 %v1481_v28, %v1386_v57 }
 0x35f   : > { %v1604_v14 = vand.u32 2147483647, %v3180_v50  ;;  %v1607_v8 = vand.u32 2139095040, %v3180_v50  ;;  %vm1606_vm13 = vcmp.lt.s32.totalorder %v3180_v50, 0 }
 0x360   : > { %v1500_v40 = vand.u32 2147483647, %v3182_v32  ;;  %v1503_v36 = vand.u32 2139095040, %v3182_v32  ;;  %v2185_v37 = vpop.f32.mrb[2].mxu1 }
 0x361   : > { %v1608_v5 = vshrl.u32 %v1607_v8, 23  ;;  %v1611_v1 = vand.u32 8388607, %v1604_v14  ;;  %v3190_v29 = vadd.f32 %v2185_v37, %v1401_v43  ;;  %v1491_v39 = vpop.f32.mrb[3].mxu1 }
 0x362   : > { %v1504_v2 = vshrl.u32 %v1503_v36, 23  ;;  %v1507_v38 = vand.u32 8388607, %v1500_v40  ;;  %v3195_v49 = vadd.f32 %v1491_v39, %v1396_v19 }
 0x363   : > { %v2120_v48 = vadd.s32 4294967169, %v1608_v5  ;;  %v1815_v6 = vand.u32 2139095040, %v3190_v29  ;;  %v1612_v53 = vor.u32 8388608, %v1611_v1  ;;  %v1812_v27 = vand.u32 2147483647, %v3190_v29 }
 0x364   : > { %v2116_v60 = vadd.s32 4294967169, %v1504_v2  ;;  %v1508_v42 = vor.u32 8388608, %v1507_v38  ;;  %v1708_v63 = vand.u32 2147483647, %v3195_v49 }
 0x365   : > { %v1614_v55 = vadd.s32 1, %v2120_v48  ;;  %v1816_v16 = vshrl.u32 %v1815_v6, 23  ;;  %v3199_v3 = vshll.u32 %v1612_v53, 8  ;;  %v3207_v44 = vand.u32 8388607, %v1812_v27 }
 0x366   : > { %v1510_v25 = vadd.s32 1, %v2116_v60  ;;  %v3203_v18 = vshll.u32 %v1508_v42, 8 }
 0x367   : > { %vm1615_vm15 = vcmp.gt.s32.totalorder %v1614_v55, 0  ;;  %v2128_v4 = vadd.s32 4294967169, %v1816_v16 }
 0x368   : > { %v1616_v13 = vsel %vm1615_vm15, %v1614_v55, 0  ;;  %vm1511_vm0 = vcmp.gt.s32.totalorder %v1510_v25, 0 }
 0x369   : > { %v1617_v61 = vshrl.u32 %v1616_v13, 5  ;;  %v1618_v51 = vand.u32 31, %v1616_v13  ;;  %v1512_v58 = vsel %vm1511_vm0, %v1510_v25, 0  ;;  %v3210_v26 = vadd.s32 1, %v2128_v4 }
 0x36a   : > { %v3201_v10 = vshrl.u32 %v1512_v58, 5  ;;  %v1514_v30 = vand.u32 31, %v1512_v58 }
 0x36b   : > { %v1619_v46 = vsub.s32 32, %v1618_v51  ;;  %v1621_v52 = vshll.u32 %v2437_v15, %v1618_v51  ;;  %v1624_v54 = vshll.u32 %v2438_v17, %v1618_v51  ;;  %v1627_v56 = vshll.u32 %v2439_v20, %v1618_v51 }
 0x36c   : > { %v1630_v12 = vshll.u32 %v2440_v22, %v1618_v51  ;;  %v1633_v0 = vshll.u32 %v2441_v24, %v1618_v51  ;;  %vm1636_vm2 = vcmp.lt.s32.totalorder %v1617_v61, 1  ;;  %vm1637_vm3 = vcmp.lt.s32.totalorder %v1617_v61, 2 }
 0x36d   : > { %v1622_v62 = vshrl.u32 %v2438_v17, %v1619_v46  ;;  %v1625_v45 = vshrl.u32 %v2439_v20, %v1619_v46  ;;  %v1628_v7 = vshrl.u32 %v2440_v22, %v1619_v46  ;;  %v1620_v47 = vshrl.u32 %v2437_v15, %v1619_v46 }
 0x36e   : > { %v1631_v11 = vshrl.u32 %v2441_v24, %v1619_v46  ;;  %v1634_v35 = vshrl.u32 %v2442_v31, %v1619_v46  ;;  %v1515_v41 = vsub.s32 32, %v1514_v30  ;;  %vm1638_vm4 = vcmp.lt.s32.totalorder %v1617_v61, 3 }
 0x36f   : > { %v1623_v9 = vor.u32 %v1622_v62, %v1621_v52  ;;  %v1626_v34 = vor.u32 %v1625_v45, %v1624_v54  ;;  %v1629_v33 = vor.u32 %v1628_v7, %v1627_v56  ;;  %vm1639_vm5 = vcmp.lt.s32.totalorder %v1617_v61, 4 }
 0x370   : > { %v1632_v21 = vor.u32 %v1631_v11, %v1630_v12  ;;  %v1635_v23 = vor.u32 %v1634_v35, %v1633_v0  ;;  %v1517_v1 = vshll.u32 %v2437_v15, %v1514_v30  ;;  %v1518_v38 = vshrl.u32 %v2438_v17, %v1515_v41 }
 0x371   : > { %v1640_v57 = vsel %vm1636_vm2, %v1620_v47, %v1623_v9  ;;  %v1641_v28 = vsel %vm1639_vm5, %v1629_v33, 2102212464  ;;  %v1644_v8 = vsel %vm1636_vm2, %v1623_v9, %v1626_v34  ;;  %v1648_v43 = vsel %vm1636_vm2, %v1626_v34, %v1629_v33 }
 0x372   : > { %v1642_v36 = vsel %vm1638_vm4, %v1626_v34, %v1641_v28  ;;  %v1645_v37 = vsel %vm1639_vm5, %v1632_v21, 920167782  ;;  %v1649_v5 = vsel %vm1639_vm5, %v1635_v23, 1326507024  ;;  %v1520_v48 = vshll.u32 %v2438_v17, %v1514_v30 }
 0x373   : > { %v1646_v39 = vsel %vm1638_vm4, %v1629_v33, %v1645_v37  ;;  %v1650_v2 = vsel %vm1638_vm4, %v1632_v21, %v1649_v5  ;;  %v1643_v19 = vsel %vm1637_vm3, %v1640_v57, %v1642_v36  ;;  %v1521_v53 = vshrl.u32 %v2439_v20, %v1515_v41 }
 0x374   : > { %v1647_v60 = vsel %vm1637_vm3, %v1644_v8, %v1646_v39  ;;  %v1651_v6 = vsel %vm1637_vm3, %v1648_v43, %v1650_v2  ;;  %v1519_v13 = vor.u32 %v1518_v38, %v1517_v1  ;;  %v1523_v51 = vshll.u32 %v2439_v20, %v1514_v30 }
 0x375   : > { %v3233_v55 = vmul.u32.u64.low %v3199_v3, %v1651_v6  ;;  %v3234_v42 = vmul.u32.u64.high %v3199_v3, %v1651_v6, %v3233_v55  ;;  %v3237_v25 = vmul.u32.u64.low %v3199_v3, %v1647_v60  ;;  %v3238_v16 = vmul.u32.u64.high %v3199_v3, %v1647_v60, %v3237_v25 }
 0x376   : > { %v1522_v4 = vor.u32 %v1521_v53, %v1520_v48  ;;  %v1524_v58 = vshrl.u32 %v2440_v22, %v1515_v41  ;;  %v1516_v46 = vshrl.u32 %v2437_v15, %v1515_v41  ;;  %v1526_v61 = vshll.u32 %v2440_v22, %v1514_v30 }
 0x377   : > { %v1527_v52 = vshrl.u32 %v2441_v24, %v1515_v41  ;;  %v1530_v54 = vshrl.u32 %v2442_v31, %v1515_v41  ;;  %v1659_v56 = vmul.u32 %v3199_v3, %v1643_v19  ;;  %v1529_v0 = vshll.u32 %v2441_v24, %v1514_v30 }
 0x378   : > { %v1525_v12 = vor.u32 %v1524_v58, %v1523_v51  ;;  %vm1532_vm6 = vcmp.lt.s32.totalorder %v3201_v10, 1  ;;  %vm1661_vm7 = vc.u32 %v3234_v42, %v3237_v25  ;;  %v1662_v62 = vadd.s32 1, %v3238_v16 }
 0x379   : > { %v1528_v45 = vor.u32 %v1527_v52, %v1526_v61  ;;  %vm1533_vm8 = vcmp.lt.s32.totalorder %v3201_v10, 2  ;;  %v1531_v7 = vor.u32 %v1530_v54, %v1529_v0  ;;  %vm1534_vm9 = vcmp.lt.s32.totalorder %v3201_v10, 3 }
 0x37a   : > { %vm1535_vm10 = vcmp.lt.s32.totalorder %v3201_v10, 4  ;;  %v1540_v47 = vsel %vm1532_vm6, %v1519_v13, %v1522_v4  ;;  %v1663_v3 = vsel %vm1661_vm7, %v1662_v62, %v3238_v16  ;;  %v1544_v30 = vsel %vm1532_vm6, %v1522_v4, %v1525_v12 }
 0x37b   : > { %v1537_v11 = vsel %vm1535_vm10, %v1525_v12, 2102212464  ;;  %v1541_v35 = vsel %vm1535_vm10, %v1528_v45, 920167782  ;;  %v1664_v9 = vadd.s32 %v1663_v3, %v1659_v56  ;;  %v1536_v34 = vsel %vm1532_vm6, %v1516_v46, %v1519_v13 }
 0x37c   : > { %v1542_v33 = vsel %vm1534_vm9, %v1525_v12, %v1541_v35  ;;  %v1545_v41 = vsel %vm1535_vm10, %v1531_v7, 1326507024  ;;  %v1538_v21 = vsel %vm1534_vm9, %v1522_v4, %v1537_v11  ;;  %vm1823_vm11 = vcmp.gt.s32.totalorder %v3210_v26, 0 }
 0x37d   : > { %v1543_v23 = vsel %vm1533_vm8, %v1540_v47, %v1542_v33  ;;  %v1546_v57 = vsel %vm1534_vm9, %v1528_v45, %v1545_v41  ;;  %v1665_v28 = vadd.s32 536870912, %v1664_v9  ;;  %v1820_v1 = vor.u32 8388608, %v3207_v44 }
 0x37e   : > { %v1547_v8 = vsel %vm1533_vm8, %v1544_v30, %v1546_v57  ;;  %v3261_v43 = vmul.u32.u64.low %v3203_v18, %v1543_v23  ;;  %v3262_v36 = vmul.u32.u64.high %v3203_v18, %v1543_v23, %v3261_v43  ;;  %v1824_v39 = vsel %vm1823_vm11, %v3210_v26, 0 }
 0x37f   : > { %v3266_v37 = vmul.u32.u64.low %v3203_v18, %v1547_v8  ;;  %v3267_v5 = vmul.u32.u64.high %v3203_v18, %v1547_v8, %v3266_v37  ;;  %v1666_v2 = vshrl.u32 %v1665_v28, 30  ;;  %v1539_v38 = vsel %vm1533_vm8, %v1536_v34, %v1538_v21 }
 0x380   : > { %v1826_v48 = vand.u32 31, %v1824_v39  ;;  %v1711_v19 = vand.u32 2139095040, %v3195_v49  ;;  %v1558_v6 = vadd.s32 1, %v3262_v36  ;;  %v1555_v55 = vmul.u32 %v3203_v18, %v1539_v38 }
 0x381   : > { %v1667_v60 = vshll.u32 %v1666_v2, 30  ;;  %vm1557_vm12 = vc.u32 %v3267_v5, %v3261_v43  ;;  %v3280_v44 = vand.u32 8388607, %v1708_v63  ;;  %v3285_v16 = vshll.u32 %v1820_v1, 8 }
 0x382   : > { %v1827_v53 = vsub.s32 32, %v1826_v48  ;;  %v1559_v10 = vsel %vm1557_vm12, %v1558_v6, %v3262_v36  ;;  %v1712_v13 = vshrl.u32 %v1711_v19, 23  ;;  %v1829_v51 = vshll.u32 %v2437_v15, %v1826_v48 }
 0x383   : > { %v3282_v26 = vsub.s32 %v1664_v9, %v1667_v60  ;;  %v1560_v4 = vadd.s32 %v1559_v10, %v1555_v55  ;;  %v1660_v46 = vadd.s32 %v3237_v25, %v3234_v42  ;;  %v1832_v52 = vshll.u32 %v2438_v17, %v1826_v48 }
 0x384   : > { %v1830_v18 = vshrl.u32 %v2438_v17, %v1827_v53  ;;  %v1833_v58 = vshrl.u32 %v2439_v20, %v1827_v53  ;;  %v1836_v54 = vshrl.u32 %v2440_v22, %v1827_v53  ;;  %v1825_v12 = vshrl.u32 %v1824_v39, 5 }
 0x385   : > { %v1670_v61 = vsub.s32 0, %v3282_v26  ;;  %v1561_v56 = vadd.s32 536870912, %v1560_v4  ;;  %v1835_v62 = vshll.u32 %v2439_v20, %v1826_v48  ;;  %v1838_v47 = vshll.u32 %v2440_v22, %v1826_v48 }
 0x386   : > { %v1831_v0 = vor.u32 %v1830_v18, %v1829_v51  ;;  %v1834_v7 = vor.u32 %v1833_v58, %v1832_v52  ;;  %v1839_v3 = vshrl.u32 %v2441_v24, %v1827_v53  ;;  %v1690_v11 = vsub.s32 4, %v1666_v2 }
 0x387   : > { %v2121_v45 = vmin.u32 %v1670_v61, %v3282_v26  ;;  %v3299_v42 = vshrl.u32 %v1561_v56, 30  ;;  %v1837_v25 = vor.u32 %v1836_v54, %v1835_v62  ;;  %v1842_v35 = vshrl.u32 %v2442_v31, %v1827_v53 }
 0x388   : > { %v1828_v9 = vshrl.u32 %v2437_v15, %v1827_v53  ;;  %v1840_v34 = vor.u32 %v1839_v3, %v1838_v47  ;;  %v1841_v33 = vshll.u32 %v2441_v24, %v1826_v48  ;;  %vm1844_vm14 = vcmp.lt.s32.totalorder %v1825_v12, 1 }
 0x389   : > { %v1672_v30 = vclz %v2121_v45  ;;  %v1563_v41 = vshll.u32 %v3299_v42, 30  ;;  %vm1846_vm15 = vcmp.lt.s32.totalorder %v1825_v12, 3  ;;  %vm1847_vm0 = vcmp.lt.s32.totalorder %v1825_v12, 4 }
 0x38a   : > { %v1843_v23 = vor.u32 %v1842_v35, %v1841_v33  ;;  %v1852_v57 = vsel %vm1844_vm14, %v1831_v0, %v1834_v7  ;;  %v1853_v28 = vsel %vm1847_vm0, %v1840_v34, 920167782  ;;  %vm1845_vm2 = vcmp.lt.s32.totalorder %v1825_v12, 2 }
 0x38b   : > { %v2122_v21 = vadd.s32 4294967294, %v1672_v30  ;;  %v3307_v8 = vsub.s32 %v1560_v4, %v1563_v41  ;;  %v1849_v36 = vsel %vm1847_vm0, %v1837_v25, 2102212464  ;;  %v1854_v37 = vsel %vm1846_vm15, %v1837_v25, %v1853_v28 }
 0x38c   : > { %v1691_v1 = vsel %vm1606_vm13, %v1690_v11, %v1666_v2  ;;  %v1855_v39 = vsel %vm1845_vm2, %v1852_v57, %v1854_v37  ;;  %v2124_v38 = vadd.s32 4294967169, %v1712_v13  ;;  %v1848_v60 = vsel %vm1844_vm14, %v1828_v9, %v1831_v0 }
 0x38d   : > { %vm2123_vm3 = vcmp.lt.s32.totalorder %v2122_v21, 0  ;;  %v1566_v19 = vsub.s32 0, %v3307_v8  ;;  %v1856_v6 = vsel %vm1844_vm14, %v1834_v7, %v1837_v25  ;;  %v1850_v10 = vsel %vm1846_vm15, %v1834_v7, %v1849_v36 }
 0x38e   : > { %v1675_v48 = vsel %vm2123_vm3, 0, %v2122_v21  ;;  %v1857_v4 = vsel %vm1847_vm0, %v1843_v23, 1326507024  ;;  %vm1502_vm4 = vcmp.lt.s32.totalorder %v3182_v32, 0  ;;  %v1718_v45 = vadd.s32 1, %v2124_v38 }
 0x38f   : > { %v1676_v53 = vsub.s32 32, %v1675_v48  ;;  %v1680_v55 = vsub.s32 4294967266, %v1675_v48  ;;  %v2117_v2 = vmin.u32 %v1566_v19, %v3307_v8  ;;  %v1858_v51 = vsel %vm1846_vm15, %v1840_v34, %v1857_v4 }
 0x390   : > { %v3323_v13 = vmul.u32.u64.low %v3285_v16, %v1855_v39  ;;  %v3324_v18 = vmul.u32.u64.high %v3285_v16, %v1855_v39, %v3323_v13  ;;  %v1677_v58 = vshll.u32 %v3282_v26, %v1675_v48  ;;  %v1859_v54 = vsel %vm1845_vm2, %v1856_v6, %v1858_v51 }
 0x391   : > { %v1678_v61 = vshrl.u32 %v1660_v46, %v1676_v53  ;;  %v1681_v52 = vadd.s32 127, %v1680_v55  ;;  %v1568_v56 = vclz %v2117_v2  ;;  %vm3335_vm5 = vcmp.le.f32.partialorder %v1604_v14, 0.7853982 }
 0x392   : > { %v3330_v0 = vmul.u32.u64.low %v3285_v16, %v1859_v54  ;;  %v3331_v62 = vmul.u32.u64.high %v3285_v16, %v1859_v54, %v3330_v0  ;;  %v1851_v26 = vsel %vm1845_vm2, %v1848_v60, %v1850_v10  ;;  %v1870_v11 = vadd.s32 1, %v3324_v18 }
 0x393   : > { %v1679_v47 = vor.u32 %v1678_v61, %v1677_v58  ;;  %v1682_v3 = vshll.u32 %v1681_v52, 23  ;;  %v2118_v46 = vadd.s32 4294967294, %v1568_v56  ;;  %v1716_v25 = vor.u32 8388608, %v3280_v44 }
 0x394   : > { %vm1719_vm6 = vcmp.gt.s32.totalorder %v1718_v45, 0  ;;  %v1693_v30 = vsel %vm3335_vm5, 0, %v1691_v1  ;;  %v1586_v9 = vsub.s32 4, %v3299_v42  ;;  %v1867_v33 = vmul.u32 %v3285_v16, %v1851_v26 }
 0x395   : > { %v1683_v35 = vor.u32 4788187, %v1682_v3  ;;  %v1720_v14 = vsel %vm1719_vm6, %v1718_v45, 0  ;;  %v1686_v34 = vcvt.s32.f32 %v1679_v47  ;;  %vm2119_vm7 = vcmp.lt.s32.totalorder %v2118_v46, 0 }
 0x396   : > { %vm1869_vm8 = vc.u32 %v3331_v62, %v3323_v13  ;;  %v1571_v41 = vsel %vm2119_vm7, 0, %v2118_v46  ;;  %v1722_v44 = vand.u32 31, %v1720_v14  ;;  %v1556_v23 = vadd.s32 %v3261_v43, %v3267_v5 }
 0x397   : > { %v1684_v12 = vand.u32 2147483647, %v1683_v35  ;;  %v1871_v21 = vsel %vm1869_vm8, %v1870_v11, %v3324_v18  ;;  %v1572_v57 = vsub.s32 32, %v1571_v41  ;;  %v1576_v28 = vsub.s32 4294967266, %v1571_v41 }
 0x398   : > { %v1872_v36 = vadd.s32 %v1871_v21, %v1867_v33  ;;  %v3351_v1 = vadd.s32 3, %v1693_v30  ;;  %vm3355_vm9 = vcmp.le.f32.partialorder %v1500_v40, 0.7853982  ;;  %v3362_v39 = vsel %vm1502_vm4, %v1586_v9, %v3299_v42 }
 0x399   : > { %v1687_v37 = vmul.f32 %v1686_v34, %v1684_v12  ;;  %v1723_v38 = vsub.s32 32, %v1722_v44  ;;  %v1573_v43 = vshll.u32 %v3307_v8, %v1571_v41  ;;  %v1574_v5 = vshrl.u32 %v1556_v23, %v1572_v57 }
 0x39a   : > { %v1577_v48 = vadd.s32 127, %v1576_v28  ;;  %v1873_v19 = vadd.s32 536870912, %v1872_v36  ;;  %v3365_v6 = vshrl.u32 %v1720_v14, 5  ;;  %v1725_v53 = vshll.u32 %v2437_v15, %v1722_v44 }
 0x39b   : > { %v1688_v60 = vxor.u32 2147483648, %v1687_v37  ;;  %v1726_v40 = vshrl.u32 %v2438_v17, %v1723_v38  ;;  %v1575_v55 = vor.u32 %v1574_v5, %v1573_v43  ;;  %v1732_v42 = vshrl.u32 %v2440_v22, %v1723_v38 }
 0x39c   : > { %v1578_v10 = vshll.u32 %v1577_v48, 23  ;;  %v3369_v4 = vshrl.u32 %v1873_v19, 30  ;;  %v1728_v8 = vshll.u32 %v2438_v17, %v1722_v44  ;;  %v1729_v51 = vshrl.u32 %v2439_v20, %v1723_v38 }
 0x39d   : > { %v1689_v2 = vsel %vm1606_vm13, %v1688_v60, %v1687_v37  ;;  %v1731_v18 = vshll.u32 %v2439_v20, %v1722_v44  ;;  %v1727_v54 = vor.u32 %v1726_v40, %v1725_v53  ;;  %v1582_v56 = vcvt.s32.f32 %v1575_v55 }
 0x39e   : > { %v1692_v58 = vsel %vm3335_vm5, %v3180_v50, %v1689_v2  ;;  %v1579_v61 = vor.u32 4788187, %v1578_v10  ;;  %v1875_v52 = vshll.u32 %v3369_v4, 30  ;;  %v1734_v0 = vshll.u32 %v2440_v22, %v1722_v44 }
 0x39f   : > { %2355 = vcosq.f32 %v1692_v58  ;;  %v1735_v45 = vshrl.u32 %v2441_v24, %v1723_v38  ;;  %v1733_v3 = vor.u32 %v1732_v42, %v1731_v18  ;;  %v1730_v20 = vor.u32 %v1729_v51, %v1728_v8 }
 0x3a0   : > { %2357 = vsinq.f32 %v1692_v58  ;;  %v1580_v17 = vand.u32 2147483647, %v1579_v61  ;;  %v3383_v47 = vsub.s32 %v1872_v36, %v1875_v52  ;;  %v1737_v7 = vshll.u32 %v2441_v24, %v1722_v44 }
 0x3a1   : > { %v1736_v26 = vor.u32 %v1735_v45, %v1734_v0  ;;  %v1738_v46 = vshrl.u32 %v2442_v31, %v1723_v38  ;;  %v1589_v35 = vsel %vm3355_vm9, 0, %v3362_v39  ;;  %v1756_v30 = vshll.u32 %v1716_v25, 8 }
 0x3a2   : > { %v1583_v11 = vmul.f32 %v1582_v56, %v1580_v17  ;;  %v1878_v22 = vsub.s32 0, %v3383_v47  ;;  %v1724_v9 = vshrl.u32 %v2437_v15, %v1723_v38  ;;  %vm1740_vm10 = vcmp.lt.s32.totalorder %v3365_v6, 1 }
 0x3a3   : > { %v1739_v14 = vor.u32 %v1738_v46, %v1737_v7  ;;  %vm1743_vm11 = vcmp.lt.s32.totalorder %v3365_v6, 4  ;;  %vm1741_vm12 = vcmp.lt.s32.totalorder %v3365_v6, 2  ;;  %vm1742_vm13 = vcmp.lt.s32.totalorder %v3365_v6, 3 }
 0x3a4   : > { %v1584_v34 = vxor.u32 2147483648, %v1583_v11  ;;  %v2129_v24 = vmin.u32 %v1878_v22, %v3383_v47  ;;  %v1745_v31 = vsel %vm1743_vm11, %v1733_v3, 2102212464  ;;  %v1744_v33 = vsel %vm1740_vm10, %v1724_v9, %v1727_v54 }
 0x3a5   : > { %v1748_v12 = vsel %vm1740_vm10, %v1727_v54, %v1730_v20  ;;  %v1749_v15 = vsel %vm1743_vm11, %v1736_v26, 920167782  ;;  %v1752_v44 = vsel %vm1740_vm10, %v1730_v20, %v1733_v3  ;;  %v1746_v57 = vsel %vm1742_vm13, %v1730_v20, %v1745_v31 }
 0x3a6   : > { %v1585_v25 = vsel %vm1502_vm4, %v1584_v34, %v1583_v11  ;;  %v1880_v41 = vclz %v2129_v24  ;;  %v1750_v21 = vsel %vm1742_vm13, %v1733_v3, %v1749_v15  ;;  %v1753_v36 = vsel %vm1743_vm11, %v1739_v14, 1326507024 }
 0x3a7   : > { %v1588_v23 = vsel %vm3355_vm9, %v3182_v32, %v1585_v25  ;;  %v1751_v28 = vsel %vm1741_vm12, %v1748_v12, %v1750_v21  ;;  %v1754_v39 = vsel %vm1742_vm13, %v1736_v26, %v1753_v36  ;;  %v1698_v38 = vand.u32 3, %v3351_v1 }
 0x3a8   : > { %2359 = vcosq.f32 %v1588_v23  ;;  %v2130_v37 = vadd.s32 4294967294, %v1880_v41  ;;  %v1755_v5 = vsel %vm1741_vm12, %v1752_v44, %v1754_v39  ;;  %v1747_v60 = vsel %vm1741_vm12, %v1744_v33, %v1746_v57 }
 0x3a9   : > { %v2356_v43 = vpop.eup %2355  ;;  %2361 = vsinq.f32 %v1588_v23  ;;  %v3413_v48 = vmul.u32.u64.low %v1756_v30, %v1751_v28  ;;  %v3414_v16 = vmul.u32.u64.high %v1756_v30, %v1751_v28, %v3413_v48  ;;  %v1593_v55 = vadd.s32 3, %v1589_v35 }
 0x3aa   : > { %v2358_v19 = vpop.eup %2357  ;;  %vm2131_vm14 = vcmp.lt.s32.totalorder %v2130_v37, 0  ;;  %v3419_v53 = vmul.u32.u64.low %v1756_v30, %v1755_v5  ;;  %v3420_v40 = vmul.u32.u64.high %v1756_v30, %v1755_v5, %v3419_v53  ;;  %vm1696_vm15 = vweird.f32 %v3180_v50 }
 0x3ab   : > { %v1883_v10 = vsel %vm2131_vm14, 0, %v2130_v37  ;;  %v1701_v1 = vxor.u32 2147483648, %v2358_v19  ;;  %vm1700_vm0 = vcmp.eq.s32.totalorder %v1698_v38, 0  ;;  %v1763_v2 = vmul.u32 %v1756_v30, %v1747_v60 }
 0x3ac   : > { %v1888_v42 = vsub.s32 4294967266, %v1883_v10  ;;  %v1766_v8 = vadd.s32 1, %v3414_v16  ;;  %v1704_v18 = vxor.u32 2147483648, %v2356_v43  ;;  %v1884_v58 = vsub.s32 32, %v1883_v10 }
 0x3ad   : > { %v1702_v51 = vsel %vm1700_vm0, %v2356_v43, %v1701_v1  ;;  %vm1765_vm2 = vc.u32 %v3420_v40, %v3413_v48  ;;  %vm1703_vm3 = vcmp.eq.s32.totalorder %v1698_v38, 2  ;;  %v1594_v52 = vand.u32 3, %v1593_v55 }
 0x3ae   : > { %v1889_v61 = vadd.s32 127, %v1888_v42  ;;  %v1767_v6 = vsel %vm1765_vm2, %v1766_v8, %v3414_v16  ;;  %vm1699_vm4 = vcmp.lt.s32.totalorder %v1698_v38, 2  ;;  %v1705_v54 = vsel %vm1703_vm3, %v1704_v18, %v2358_v19 }
 0x3af   : > { %v1868_v56 = vadd.s32 %v3323_v13, %v3331_v62  ;;  %v1768_v45 = vadd.s32 %v1767_v6, %v1763_v2  ;;  %v1706_v17 = vsel %vm1699_vm4, %v1702_v51, %v1705_v54  ;;  %vm2444_vm5 = vmmov 0  }
 0x3b0   : > { %v1890_v0 = vshll.u32 %v1889_v61, 23  ;;  %v1707_v3 = vsel %vm1696_vm15, nan, %v1706_v17  ;;  %v2445_v46 = vmov 0.0   ;;  %vm1599_vm6 = vcmp.eq.s32.totalorder %v1594_v52, 2 }
 0x3b1   : > { %v1886_v26 = vshrl.u32 %v1868_v56, %v1884_v58  ;;  %v1769_v7 = vadd.s32 536870912, %v1768_v45  ;;  %2194 = vmatprep.mubr.msk.f32.mxu0 %vm2444_vm5, %v2445_v46  ;;  %v1885_v22 = vshll.u32 %v3383_v47, %v1883_v10  ;;  %vm1596_vm7 = vcmp.eq.s32.totalorder %v1594_v52, 0 }
 0x3b2   : > { %v2360_v20 = vpop.eup %2359  ;;  %v1891_v30 = vor.u32 4788187, %v1890_v0  ;;  %vm1595_vm8 = vcmp.lt.s32.totalorder %v1594_v52, 2  ;;  %vm1592_vm9 = vweird.f32 %v3182_v32  ;;  %vm1814_vm11 = vcmp.lt.s32.totalorder %v3190_v29, 0 }
 0x3b3   : > { %v2362_v11 = vpop.eup %2361  ;;  %v1600_v35 = vxor.u32 2147483648, %v2360_v20  ;;  %v1770_v9 = vshrl.u32 %v1769_v7, 30  ;;  %v1887_v14 = vor.u32 %v1886_v26, %v1885_v22  ;;  %v1764_v36 = vadd.s32 %v3413_v48, %v3420_v40 }
 0x3b4   : > { %v1597_v13 = vxor.u32 2147483648, %v2362_v11  ;;  %v1892_v31 = vand.u32 2147483647, %v1891_v30  ;;  %vm3441_vm12 = vcmp.le.f32.partialorder %v1812_v27, 0.7853982  ;;  %v1898_v53 = vsub.s32 4, %v3369_v4 }
 0x3b5   : > { %v1601_v62 = vsel %vm1599_vm6, %v1600_v35, %v2362_v11  ;;  %v1771_v34 = vshll.u32 %v1770_v9, 30  ;;  %v1894_v25 = vcvt.s32.f32 %v1887_v14  ;;  %v1794_v1 = vsub.s32 4, %v1770_v9 }
 0x3b6   : > { %v1598_v50 = vsel %vm1596_vm7, %v2360_v20, %v1597_v13  ;;  %v1899_v27 = vsel %vm1814_vm11, %v1898_v53, %v3369_v4  ;;  %vm1710_vm13 = vcmp.lt.s32.totalorder %v3195_v49, 0  ;;  %vm1709_vm14 = vcmp.le.f32.partialorder %v1708_v63, 0.7853982 }
 0x3b7   : > { %v1602_v24 = vsel %vm1595_vm8, %v1598_v50, %v1601_v62  ;;  %v1772_v33 = vsub.s32 %v1768_v45, %v1771_v34  ;;  %v1895_v47 = vmul.f32 %v1894_v25, %v1892_v31  ;;  %v1901_v42 = vsel %vm3441_vm12, 0, %v1899_v27  ;;  %v1916_v62 = vld [vmem:[%s3518_s7] sm:$0x7] }
 0x3b8   : > { %v1603_v12 = vsel %vm1592_vm9, nan, %v1602_v24  ;;  %v1795_v51 = vsel %vm1710_vm13, %v1794_v1, %v1770_v9  ;;  %v1905_v18 = vadd.s32 3, %v1901_v42  ;;  %vm1904_vm5 = vweird.f32 %v3190_v29 }
 0x3b9   : > { %v2214_v15 = vpack.c.bf16 %v1707_v3, %v1603_v12  ;;  %v1774_v41 = vsub.s32 0, %v1772_v33  ;;  %v1896_v23 = vxor.u32 2147483648, %v1895_v47  ;;  %v1797_v4 = vsel %vm1709_vm14, 0, %v1795_v51 }
 0x3ba   : > { %v1906_v52 = vand.u32 3, %v1905_v18  ;;  %v1801_v54 = vadd.s32 3, %v1797_v4  ;;  %vm1800_vm7 = vweird.f32 %v3195_v49 }
 0x3bb   : > { %2215 = vmatpush3.bf16.msra.mxu0 %v2214_v15  ;;  %v2125_v21 = vmin.u32 %v1774_v41, %v1772_v33  ;;  %v1897_v32 = vsel %vm1814_vm11, %v1896_v23, %v1895_v47 }
 0x3bc   : > { %2216 = vmatprep.subr.bf16.mxu0 %v2443_v59  ;;  %v1900_v16 = vsel %vm3441_vm12, %v3190_v29, %v1897_v32  ;;  %vm1908_vm15 = vcmp.eq.s32.totalorder %v1906_v52, 0  ;;  %vm1911_vm0 = vcmp.eq.s32.totalorder %v1906_v52, 2  ;;  %v1802_v45 = vand.u32 3, %v1801_v54  ;;  %v1921_v29 = vpop.permute.xlu0 %1920 }
 0x3bd   : > { %v1776_v44 = vclz %v2125_v21  ;;  %2363 = vcosq.f32 %v1900_v16  ;;  %vm1907_vm2 = vcmp.lt.s32.totalorder %v1906_v52, 2 }
 0x3be   : > { %2365 = vsinq.f32 %v1900_v16  ;;  %vm1807_vm3 = vcmp.eq.s32.totalorder %v1802_v45, 2  ;;  %vm1804_vm4 = vcmp.eq.s32.totalorder %v1802_v45, 0  ;;  %vm1803_vm6 = vcmp.lt.s32.totalorder %v1802_v45, 2 }
 0x3bf   : > { %v2126_v57 = vadd.s32 4294967294, %v1776_v44 }
 0x3c1   : > { %vm2127_vm10 = vcmp.lt.s32.totalorder %v2126_v57, 0 }
 0x3c2   : > { %v1779_v28 = vsel %vm2127_vm10, 0, %v2126_v57 }
 0x3c3   : > { %v1780_v37 = vsub.s32 32, %v1779_v28  ;;  %v1784_v39 = vsub.s32 4294967266, %v1779_v28  ;;  %v1781_v59 = vshll.u32 %v1772_v33, %v1779_v28 }
 0x3c5   : > { %v1782_v43 = vshrl.u32 %v1764_v36, %v1780_v37  ;;  %v1785_v5 = vadd.s32 127, %v1784_v39 }
 0x3c7   : > { %v1783_v19 = vor.u32 %v1782_v43, %v1781_v59  ;;  %v1786_v60 = vshll.u32 %v1785_v5, 23  ;;  %v2364_v61 = vpop.eup %2363 }
 0x3c8   : > { %v2366_v6 = vpop.eup %2365  ;;  %v1912_v0 = vxor.u32 2147483648, %v2364_v61 }
 0x3c9   : > { %v1787_v48 = vor.u32 4788187, %v1786_v60  ;;  %v1790_v55 = vcvt.s32.f32 %v1783_v19  ;;  %v1909_v56 = vxor.u32 2147483648, %v2366_v6 }
 0x3ca   : > { %v1913_v3 = vsel %vm1911_vm0, %v1912_v0, %v2366_v6 }
 0x3cb   : > { %v1788_v40 = vand.u32 2147483647, %v1787_v48  ;;  %v1910_v17 = vsel %vm1908_vm15, %v2364_v61, %v1909_v56 }
 0x3cc   : > { %v1914_v7 = vsel %vm1907_vm2, %v1910_v17, %v1913_v3 }
 0x3cd   : > { %v1791_v10 = vmul.f32 %v1790_v55, %v1788_v40  ;;  %v1915_v22 = vsel %vm1904_vm5, nan, %v1914_v7 }
 0x3cf   : > { %v1792_v2 = vxor.u32 2147483648, %v1791_v10 }
 0x3d1   : > { %v1793_v8 = vsel %vm1710_vm13, %v1792_v2, %v1791_v10 }
 0x3d2   : > { %v1796_v58 = vsel %vm1709_vm14, %v3195_v49, %v1793_v8 }
 0x3d3   : > { %2367 = vcosq.f32 %v1796_v58 }
 0x3d4   : > { %2369 = vsinq.f32 %v1796_v58 }
 0x3dd   : > { %v2368_v63 = vpop.eup %2367 }
 0x3de   : > { %v2370_v20 = vpop.eup %2369  ;;  %v1808_v26 = vxor.u32 2147483648, %v2368_v63 }
 0x3df   : > { %v1805_v46 = vxor.u32 2147483648, %v2370_v20 }
 0x3e0   : > { %v1809_v11 = vsel %vm1807_vm3, %v1808_v26, %v2370_v20 }
 0x3e1   : > { %v1806_v35 = vsel %vm1804_vm4, %v2368_v63, %v1805_v46 }
 0x3e2   : > { %v1810_v30 = vsel %vm1803_vm6, %v1806_v35, %v1809_v11 }
 0x3e3   : > { %v1811_v9 = vsel %vm1800_vm7, nan, %v1810_v30 }
 0x3e4   : > { %v2217_v13 = vpack.c.bf16 %v1915_v22, %v1811_v9 }
 0x3e6   : > { %2218 = vmatpush3.bf16.msra.mxu0 %v2217_v13 }
 0x3e9   : > { %2195 = vmatmul.mubr.msk.f32.vlgmr.msra.gmra.mrb[4].mxu0 %vm861_vm1, %v1916_v62 }
 0x4bc   : > { %v1992_v14 = vpop.f32.mrb[4].mxu0 }
 0x4bd   : > { %v1993_v34 = vadd.f32 %v1992_v14, %v1921_v29  ;;  %v2196_v49 = vpop.f32.mrb[5].mxu0 }
 0x4bf   : > { %1996 = vst [vmem:[%s323_s21] sm:$0x7] %v1993_v34 }
 0x4c0   : > { %2384 = shalt.err (!%p2381_p3)
}
 0x4c1   : > { %s2385_s14 = scalar_lea.hbm %s3469_s25, 64  ;;  %s2389_s21 = scalar_lea.hbm %s3520_s9, 128 }
 0x4c2   : > { %p2386_p4 = scmp.ne.s32.totalorder %s3469_s25, %s2385_s14  ;;  %p2390_p9 = scmp.lt.u32.totalorder %s3469_s25, %s3520_s9 }
 0x4c3   : > { %p2391_p10 = scmp.lt.u32.totalorder %s2389_s21, %s2385_s14  ;;  %p2393_p12 = scmp.lt.u32.totalorder %s2385_s14, %s3469_s25 }
 0x4c4   : > { %p2387_p7 = pnand %p2386_p4, %p2535_p5 }
 0x4c5   : > { %p2392_p11 = por %p2391_p10, %p2390_p9 }
 0x4c6   : > { %p2388_p8 = pneg %p2387_p7 }
 0x4c7   : > { %p2394_p13 = por %p2393_p12, %p2392_p11 }
 0x4c9   : > { %p2395_p0 = pnand %p2394_p13, %p2388_p8 }
 0x4cb   : > { %2398 = shalt.err (!%p2395_p0)
}
 0x4cc   : > { %2267 = dma.vmem_to_hbm [thread:$0]  (%p2535_p5), %s3471_s22, 64, %s3469_s25, %s1998_s26  }
 0x4cd PF: > { %p2273_p1 = scmp.ge.s32.totalorder %s2433_s12, 2  ;;  %s2023_s27 = sand.u32 1, %s2421_s30  }
 0x4ce   : > { %s2024_s13 = scalar_lea.sflag [#allocation3], %s2023_s27 }
 0x4cf   : > { %p2270_p2 = pnand %p2273_p1, %p2539_p6 }
 0x4d1   : > { %2416 = dma.done.wait (!%p2270_p2), %s2024_s13, 64  }
 0x4d2   : > { %2418 = vsyncadd (!%p2270_p2), %s2024_s13, 4294967232  ;;  %p19_p3 = scmp.ge.s32.totalorder %s2522_s15, 4   ;;  %s3541_s30 = smov %s2425_s10 }
 0x4d3   : > { %s3542_s10 = smov %s2429_s11  ;;  %s3543_s11 = smov %s2533_s18 }
 0x4d4   : > { %s3544_s12 = smov %s2522_s15  ;;  %21 = sbr.rel (!%p19_p3) target bundleno = 3 (0x3), region = 91 }
 0x4db   :  { %2029 = vsyncpa [#allocation3], 1 }
 0x4dc   :  { %2031 = vsyncpa [#allocation3 + $0x1], 1 }

</bundles_post_ra>
